<compile_context>
chip_gen: v7x
topology: tpu7x:2x2x1
jax: 0.10.0
libtpu: 0.0.40
codegen_flags: <defaults>
</compile_context>

<pallas_src>
import functools

import jax
import jax.numpy as jnp
from jax.experimental import pallas as pl
from jax.experimental.pallas import tpu as pltpu


_LANE = 128
_NEG_INF = -1e30  # finite "minus infinity" for padded class logits


def _round_up(n, m):
    return ((n + m - 1) // m) * m


def _num_tensorcores():
    """Best-effort TC-per-chip detection (v7x has 2); safe fallback = 1."""
    try:
        kind = jax.devices()[0].device_kind.lower()
    except Exception:
        return 1
    return 2 if ("v7" in kind or "7x" in kind) else 1


def _pick_tb(batch):
    """Generation-aware batch tile: grid=1 on single-TC chips, >=2 tiles on v7x."""
    if _num_tensorcores() >= 2:
        tb = min(256, _round_up(pl.cdiv(batch, 2), 8))
    else:
        tb = min(512, _round_up(batch, 8))
    return max(tb, 8)


def _softmax_lanes(z):
    """Numerically-stable softmax over the lane (last) axis, f32."""
    m = jnp.max(z, axis=-1, keepdims=True)
    e = jnp.exp(z - m)
    return e * pl.reciprocal(jnp.sum(e, axis=-1, keepdims=True), approx=True)


def gnbg_inject_kernel(x_ref, w1_ref, b1_ref, w2_ref, b2_ref, o_ref, *, c_pad):
    # ---- fused first layer: one bf16 matmul computes hidden for BOTH nets ----
    h = jnp.dot(x_ref[...], w1_ref[...], preferred_element_type=jnp.float32)
    h = jnp.maximum(h + b1_ref[...], 0.0)                      # ReLU in f32

    # ---- fused second layer: block-diagonal weight -> [logits1 | logits2] ----
    logits = jnp.dot(h.astype(jnp.bfloat16), w2_ref[...],
                     preferred_element_type=jnp.float32) + b2_ref[...]

    # ---- F.softmax (dim=1); padded class columns carry -1e30 bias -> exp()=0 ----
    p1 = _softmax_lanes(logits[:, :c_pad])                     # net1 probs
    p2 = _softmax_lanes(logits[:, c_pad:])                     # net2 probs

    # ---- y2[:, 0] = y1[:, 1] * 2 + y2[:, 0], fused into ONE lane-dense store ----
    inj = p2[:, 0:1] + 2.0 * p1[:, 1:2]                        # (tb, 1)
    lane = jax.lax.broadcasted_iota(jnp.int32, p2.shape, dimension=1)
    o_ref[...] = jnp.where(lane == 0, inj, p2).astype(o_ref.dtype)


def prepare_params(params):
    """One-time fusion/padding/bf16 cast of the two sub-nets' weights.

    Both hidden layers share a single 128-lane block (net1 -> [0:H],
    net2 -> [H:2H]); the second layer is block-diagonal so one matmul yields
    [logits1 | logits2].  Padded class columns get a -1e30 bias so they vanish
    from the softmax.
    """
    D, H = params["w1a"].shape
    C = params["w1b"].shape[1]

    d_pad = _round_up(D, 16)            # bf16 sublane packing; no 128-lane pad
    hid = _round_up(2 * H, _LANE)       # both hiddens packed into one lane block
    c_pad = _round_up(C, _LANE)

    f32 = jnp.float32

    w1 = jnp.zeros((d_pad, hid), f32)
    w1 = w1.at[:D, :H].set(params["w1a"])
    w1 = w1.at[:D, H:2 * H].set(params["w2a"])
    b1 = jnp.zeros((1, hid), f32)
    b1 = b1.at[:, :H].set(params["b1a"].reshape(1, H))
    b1 = b1.at[:, H:2 * H].set(params["b2a"].reshape(1, H))

    w2 = jnp.zeros((hid, 2 * c_pad), f32)
    w2 = w2.at[:H, :C].set(params["w1b"])
    w2 = w2.at[H:2 * H, c_pad:c_pad + C].set(params["w2b"])
    b2 = jnp.full((1, 2 * c_pad), _NEG_INF, f32)
    b2 = b2.at[:, :C].set(params["b1b"].reshape(1, C))
    b2 = b2.at[:, c_pad:c_pad + C].set(params["b2b"].reshape(1, C))

    return {
        "w1": w1.astype(jnp.bfloat16),
        "b1": b1,
        "w2": w2.astype(jnp.bfloat16),
        "b2": b2,
        "n_classes": C,
    }


@functools.partial(jax.jit, static_argnames=("n_classes", "tb"))
def _forward_impl(x, w1, b1, w2, b2, *, n_classes, tb):
    B, D = x.shape
    d_pad, hid = w1.shape
    c_pad = w2.shape[1] // 2
    b_pad = _round_up(B, tb)

    # Pad x only if actually needed (at B % tb == 0 and D == d_pad this is just
    # a bf16 cast -- no zero-padded HBM copy).
    if B != b_pad or D != d_pad:
        x_p = jnp.zeros((b_pad, d_pad), x.dtype).at[:B, :D].set(x)
    else:
        x_p = x
    x_p = x_p.astype(jnp.bfloat16)

    kernel = functools.partial(gnbg_inject_kernel, c_pad=c_pad)

    flops = 2 * b_pad * (d_pad * hid + hid * 2 * c_pad)
    bytes_accessed = (x_p.size * 2 + w1.size * 2 + w2.size * 2
                      + b1.size * 4 + b2.size * 4 + b_pad * c_pad * 4)

    out = pl.pallas_call(
        kernel,
        out_shape=jax.ShapeDtypeStruct((b_pad, c_pad), jnp.float32),
        grid_spec=pltpu.PrefetchScalarGridSpec(
            num_scalar_prefetch=0,
            grid=(b_pad // tb,),
            in_specs=[
                pl.BlockSpec((tb, d_pad), lambda i: (i, 0)),        # x tiles pipeline
                pl.BlockSpec((d_pad, hid), lambda i: (0, 0)),       # weights VMEM-resident
                pl.BlockSpec((1, hid), lambda i: (0, 0)),
                pl.BlockSpec((hid, 2 * c_pad), lambda i: (0, 0)),
                pl.BlockSpec((1, 2 * c_pad), lambda i: (0, 0)),
            ],
            out_specs=pl.BlockSpec((tb, c_pad), lambda i: (i, 0)),
        ),
        compiler_params=pltpu.CompilerParams(
            dimension_semantics=("parallel",),   # shard batch tiles across TCs (v7x)
            vmem_limit_bytes=32 * 1024 * 1024,
        ),
        cost_estimate=pl.CostEstimate(
            flops=flops,
            transcendentals=b_pad * 2 * c_pad,
            bytes_accessed=bytes_accessed,
        ),
    )(x_p, w1, b1, w2, b2)

    return out[:B, :n_classes]


def gnbg_inject_forward(x, fused, tb=None):
    if tb is None:
        tb = _pick_tb(x.shape[0])
    return _forward_impl(x, fused["w1"], fused["b1"], fused["w2"], fused["b2"],
                         n_classes=fused["n_classes"], tb=tb)


def init_params(key, d_in, hidden, n_classes):
    ks = jax.random.split(key, 8)
    s = 0.1
    return {
        "w1a": s * jax.random.normal(ks[0], (d_in, hidden), jnp.float32),
        "b1a": s * jax.random.normal(ks[1], (1, hidden), jnp.float32),
        "w1b": s * jax.random.normal(ks[2], (hidden, n_classes), jnp.float32),
        "b1b": s * jax.random.normal(ks[3], (1, n_classes), jnp.float32),
        "w2a": s * jax.random.normal(ks[4], (d_in, hidden), jnp.float32),
        "b2a": s * jax.random.normal(ks[5], (1, hidden), jnp.float32),
        "w2b": s * jax.random.normal(ks[6], (hidden, n_classes), jnp.float32),
        "b2b": s * jax.random.normal(ks[7], (1, n_classes), jnp.float32),
    }


def reference_forward(x, p):
    def net(x, wa, ba, wb, bb):
        h = jnp.maximum(x @ wa + ba, 0.0)
        return h @ wb + bb
    y1 = jax.nn.softmax(net(x, p["w1a"], p["b1a"], p["w1b"], p["b1b"]), axis=1)
    y2 = jax.nn.softmax(net(x, p["w2a"], p["b2a"], p["w2b"], p["b2b"]), axis=1)
    return y2.at[:, 0].set(y1[:, 1] * 2.0 + y2[:, 0])


if __name__ == "__main__":
    B, D, H, C = 256, 32, 32, 8
    key = jax.random.PRNGKey(0)
    kx, kp = jax.random.split(key)
    x = jax.random.normal(kx, (B, D), jnp.float32)
    params = init_params(kp, D, H, C)

    # One-time param prep (fusion + padding + bf16 cast) -- NOT in the per-call path.
    fused = jax.tree_util.tree_map(
        lambda a: jax.block_until_ready(a) if isinstance(a, jax.Array) else a,
        prepare_params(params))

    out = jax.block_until_ready(gnbg_inject_forward(x, fused))

    ref = reference_forward(x, params)
    assert out.shape == (B, C)
    # Tolerance loosened for bf16 MXU operands + approx reciprocal in softmax.
    assert jnp.allclose(out, ref, atol=2e-2, rtol=2e-2), "mismatch vs JAX reference"

    print("KERNEL_OK")
</pallas_src>

<mosaic_0001>
module attributes {stable_mosaic.version = 11 : i64} {
  func.func @gnbg_inject_kernel(%arg0: i32, %arg1: memref<256x32xbf16, #tpu.memory_space<vmem>>, %arg2: memref<32x128xbf16, #tpu.memory_space<vmem>>, %arg3: memref<1x128xf32, #tpu.memory_space<vmem>>, %arg4: memref<128x256xbf16, #tpu.memory_space<vmem>>, %arg5: memref<1x256xf32, #tpu.memory_space<vmem>>, %arg6: memref<256x128xf32, #tpu.memory_space<vmem>>) attributes {dimension_semantics = [#tpu.dimension_semantics<parallel>], iteration_bounds = array<i64: 1>, scalar_prefetch = 0 : i64, scratch_operands = 0 : i64, tpu.core_type = #tpu.core_type<tc>, window_params = [{transform_indices = @transform_0, window_bounds = array<i64: 256, 32>}, {pipeline_mode = #tpu.pipeline_mode<synchronous>, transform_indices = @transform_1, window_bounds = array<i64: 32, 128>}, {pipeline_mode = #tpu.pipeline_mode<synchronous>, transform_indices = @transform_2, window_bounds = array<i64: 1, 128>}, {pipeline_mode = #tpu.pipeline_mode<synchronous>, transform_indices = @transform_3, window_bounds = array<i64: 128, 256>}, {pipeline_mode = #tpu.pipeline_mode<synchronous>, transform_indices = @transform_4, window_bounds = array<i64: 1, 256>}, {transform_indices = @transform_5, window_bounds = array<i64: 256, 128>}]} {
    %c0 = arith.constant 0 : index
    %c0_0 = arith.constant 0 : index
    %0 = vector.load %arg1[%c0, %c0_0] : memref<256x32xbf16, #tpu.memory_space<vmem>>, vector<256x32xbf16>
    %c0_1 = arith.constant 0 : index
    %c0_2 = arith.constant 0 : index
    %1 = vector.load %arg2[%c0_1, %c0_2] : memref<32x128xbf16, #tpu.memory_space<vmem>>, vector<32x128xbf16>
    %cst = arith.constant dense<0.000000e+00> : vector<256x128xf32>
    %2 = tpu.matmul %0, %1, %cst {dimension_numbers = #tpu.dot_dimension_numbers<[1], [0], [0], [1], [0, 0, 1, 1], [], []>} : vector<256x32xbf16>, vector<32x128xbf16>, vector<256x128xf32> -> vector<256x128xf32>
    %c0_3 = arith.constant 0 : index
    %c0_4 = arith.constant 0 : index
    %3 = vector.load %arg3[%c0_3, %c0_4] : memref<1x128xf32, #tpu.memory_space<vmem>>, vector<1x128xf32>
    %4 = vector.broadcast %3 : vector<1x128xf32> to vector<256x128xf32>
    %5 = arith.addf %2, %4 : vector<256x128xf32>
    %cst_5 = arith.constant 0.000000e+00 : f32
    %6 = vector.broadcast %cst_5 : f32 to vector<256x128xf32>
    %7 = arith.maximumf %5, %6 : vector<256x128xf32>
    %8 = arith.truncf %7 : vector<256x128xf32> to vector<256x128xbf16>
    %c0_6 = arith.constant 0 : index
    %c0_7 = arith.constant 0 : index
    %9 = vector.load %arg4[%c0_6, %c0_7] : memref<128x256xbf16, #tpu.memory_space<vmem>>, vector<128x256xbf16>
    %cst_8 = arith.constant dense<0.000000e+00> : vector<256x256xf32>
    %10 = tpu.matmul %8, %9, %cst_8 {dimension_numbers = #tpu.dot_dimension_numbers<[1], [0], [0], [1], [0, 0, 1, 1], [], []>} : vector<256x128xbf16>, vector<128x256xbf16>, vector<256x256xf32> -> vector<256x256xf32>
    %c0_9 = arith.constant 0 : index
    %c0_10 = arith.constant 0 : index
    %11 = vector.load %arg5[%c0_9, %c0_10] : memref<1x256xf32, #tpu.memory_space<vmem>>, vector<1x256xf32>
    %12 = vector.broadcast %11 : vector<1x256xf32> to vector<256x256xf32>
    %13 = arith.addf %10, %12 : vector<256x256xf32>
    %14 = vector.extract_strided_slice %13 {offsets = [0, 0], sizes = [256, 128], strides = [1, 1]} : vector<256x256xf32> to vector<256x128xf32>
    %cst_11 = arith.constant dense<0xFF800000> : vector<256xf32>
    %15 = vector.multi_reduction <maximumf>, %14, %cst_11 [1] : vector<256x128xf32> to vector<256xf32>
    %16 = vector.shape_cast %15 : vector<256xf32> to vector<256x1xf32>
    %17 = vector.broadcast %16 : vector<256x1xf32> to vector<256x128xf32>
    %18 = arith.subf %14, %17 : vector<256x128xf32>
    %19 = math.exp %18 : vector<256x128xf32>
    %cst_12 = arith.constant dense<0.000000e+00> : vector<256xf32>
    %20 = vector.multi_reduction <add>, %19, %cst_12 [1] : vector<256x128xf32> to vector<256xf32>
    %21 = vector.shape_cast %20 : vector<256xf32> to vector<256x1xf32>
    %22 = tpu.reciprocal %21 {approx = true} : vector<256x1xf32> -> vector<256x1xf32>
    %23 = vector.broadcast %22 : vector<256x1xf32> to vector<256x128xf32>
    %24 = arith.mulf %19, %23 : vector<256x128xf32>
    %25 = vector.extract_strided_slice %13 {offsets = [0, 128], sizes = [256, 128], strides = [1, 1]} : vector<256x256xf32> to vector<256x128xf32>
    %cst_13 = arith.constant dense<0xFF800000> : vector<256xf32>
    %26 = vector.multi_reduction <maximumf>, %25, %cst_13 [1] : vector<256x128xf32> to vector<256xf32>
    %27 = vector.shape_cast %26 : vector<256xf32> to vector<256x1xf32>
    %28 = vector.broadcast %27 : vector<256x1xf32> to vector<256x128xf32>
    %29 = arith.subf %25, %28 : vector<256x128xf32>
    %30 = math.exp %29 : vector<256x128xf32>
    %cst_14 = arith.constant dense<0.000000e+00> : vector<256xf32>
    %31 = vector.multi_reduction <add>, %30, %cst_14 [1] : vector<256x128xf32> to vector<256xf32>
    %32 = vector.shape_cast %31 : vector<256xf32> to vector<256x1xf32>
    %33 = tpu.reciprocal %32 {approx = true} : vector<256x1xf32> -> vector<256x1xf32>
    %34 = vector.broadcast %33 : vector<256x1xf32> to vector<256x128xf32>
    %35 = arith.mulf %30, %34 : vector<256x128xf32>
    %36 = vector.extract_strided_slice %35 {offsets = [0, 0], sizes = [256, 1], strides = [1, 1]} : vector<256x128xf32> to vector<256x1xf32>
    %37 = vector.extract_strided_slice %24 {offsets = [0, 1], sizes = [256, 1], strides = [1, 1]} : vector<256x128xf32> to vector<256x1xf32>
    %cst_15 = arith.constant 2.000000e+00 : f32
    %38 = vector.broadcast %cst_15 : f32 to vector<256x1xf32>
    %39 = arith.mulf %38, %37 : vector<256x1xf32>
    %40 = arith.addf %36, %39 : vector<256x1xf32>
    %41 = tpu.iota {dimensions = array<i32: 1>} : vector<256x128xi32>
    %c0_i32 = arith.constant 0 : i32
    %42 = vector.broadcast %c0_i32 : i32 to vector<256x128xi32>
    %43 = arith.cmpi eq, %41, %42 : vector<256x128xi32>
    %44 = vector.shape_cast %40 : vector<256x1xf32> to vector<256x1xf32>
    %45 = vector.broadcast %44 : vector<256x1xf32> to vector<256x128xf32>
    %46 = arith.select %43, %45, %35 : vector<256x128xi1>, vector<256x128xf32>
    %c0_16 = arith.constant 0 : index
    %c0_17 = arith.constant 0 : index
    %47 = vector.load %arg6[%c0_16, %c0_17] : memref<256x128xf32, #tpu.memory_space<vmem>>, vector<256x128xf32>
    tpu.vector_store %arg6[%c0_16, %c0_17], %46 {strides = array<i32>} : memref<256x128xf32, #tpu.memory_space<vmem>>, vector<256x128xf32>,
    return
  }
  func.func @transform_0(%arg0: i32) -> (i32, i32) {
    %c0_i32 = arith.constant 0 : i32
    %c0_i32_0 = arith.constant 0 : i32
    return %arg0, %c0_i32 : i32, i32
  }
  func.func @transform_1(%arg0: i32) -> (i32, i32) {
    %c0_i32 = arith.constant 0 : i32
    %c0_i32_0 = arith.constant 0 : i32
    %c0_i32_1 = arith.constant 0 : i32
    return %c0_i32, %c0_i32_0 : i32, i32
  }
  func.func @transform_2(%arg0: i32) -> (i32, i32) {
    %c0_i32 = arith.constant 0 : i32
    %c0_i32_0 = arith.constant 0 : i32
    %c0_i32_1 = arith.constant 0 : i32
    return %c0_i32, %c0_i32_0 : i32, i32
  }
  func.func @transform_3(%arg0: i32) -> (i32, i32) {
    %c0_i32 = arith.constant 0 : i32
    %c0_i32_0 = arith.constant 0 : i32
    %c0_i32_1 = arith.constant 0 : i32
    return %c0_i32, %c0_i32_0 : i32, i32
  }
  func.func @transform_4(%arg0: i32) -> (i32, i32) {
    %c0_i32 = arith.constant 0 : i32
    %c0_i32_0 = arith.constant 0 : i32
    %c0_i32_1 = arith.constant 0 : i32
    return %c0_i32, %c0_i32_0 : i32, i32
  }
  func.func @transform_5(%arg0: i32) -> (i32, i32) {
    %c0_i32 = arith.constant 0 : i32
    %c0_i32_0 = arith.constant 0 : i32
    return %arg0, %c0_i32 : i32, i32
  }
}

</mosaic_0001>

<bundles_post_ra>
// kernel: _forward_impl.1
= control target key start
LH: loop header
LB: loop body
LE: loop exit
PB: predicated region body
PF: predicated region fallthrough
CT: control target
= control target key end

     0   :  { %vm156_vm0 = vcmask 261120   ;;  %v2137_v34 = vmov 0   ;;  %s3346_s1 = inlined_call_operand.vmem [shape: bf16[32,128], index: 1, kind: input, shape index: {}]   ;;  %s3347_s0 = inlined_call_operand.vmem [shape: bf16[256,32], index: 0, kind: input, shape index: {}]   ;;  %s3348_s3 = inlined_call_operand.vmem [shape: bf16[128,256], index: 3, kind: input, shape index: {}]   ;;  %s3349_s2 = inlined_call_operand.vmem [shape: f32[1,128], index: 2, kind: input, shape index: {}]   ;;  %s3350_s4 = inlined_call_operand.vmem [shape: f32[1,256], index: 4, kind: input, shape index: {}]   ;;  %s3351_s5 = inlined_call_operand.vmem [shape: f32[256,128], index: 5, kind: output, shape index: {}]  }
   0x1   :  { %v1839_v0 = vld [vmem:[%s3346_s1] sm:$0xff]   ;;  %v1840_v1 = vld [vmem:[%s3346_s1 + $0x8] sm:$0xff]   ;;  %v1843_v4 = vld [vmem:[%s3347_s0 + $0x10] sm:$0xff]   ;;  %604 = vmatprep.mubr.bf16.mxu1 %v2137_v34  ;;  %1837 = vset.pattern.permute.xlu0 %v2137_v34 }
   0x2   :  { %1783 = vmatprep.subr.bf16.mxu0 %v1839_v0  ;;  %v1841_v2 = vld [vmem:[%s3347_s0] sm:$0xff]   ;;  %v1842_v3 = vld [vmem:[%s3347_s0 + $0x8] sm:$0xff]   ;;  %v1844_v5 = vld [vmem:[%s3347_s0 + $0x18] sm:$0xff]   ;;  %1838 = vset.pattern.permute.xlu1 %v2137_v34 }
   0x3   :  { %1784 = vmatpush3.bf16.msra.mxu0 %v1839_v0  ;;  %1787 = vmatprep.mubr.msk.bf16.mxu0 %vm156_vm0, %v1841_v2  ;;  %v1845_v6 = vld [vmem:[%s3347_s0 + $0x20] sm:$0xff]   ;;  %v1862_v9 = vld [vmem:[%s3348_s3 + $0x14] ss:$8 sps:$4 sm:$0xff]   ;;  %v1846_v10 = vld [vmem:[%s3347_s0 + $0x28] sm:$0xff]  }
   0x4   :  { %1785 = vmatprep.subr.bf16.mxu0 %v1840_v1  ;;  %v1857_v7 = vld [vmem:[%s3348_s3] ss:$8 sps:$4 sm:$0xff]   ;;  %v1859_v8 = vld [vmem:[%s3348_s3 + $0x4] ss:$8 sps:$4 sm:$0xff]   ;;  %v1847_v11 = vld [vmem:[%s3347_s0 + $0x30] sm:$0xff]  }
   0x5   :  { %1819 = vmatprep.subr.bf16.mxu1 %v1859_v8  ;;  %v1860_v12 = vld [vmem:[%s3348_s3 + $0x10] ss:$8 sps:$4 sm:$0xff]   ;;  %v1865_v13 = vld [vmem:[%s3348_s3 + $0x24] ss:$8 sps:$4 sm:$0xff]   ;;  %v1863_v14 = vld [vmem:[%s3348_s3 + $0x20] ss:$8 sps:$4 sm:$0xff]  }
   0x6   :  { %1827 = vmatpush1.bf16.msra.mxu1 %v1857_v7  ;;  %v1868_v15 = vld [vmem:[%s3348_s3 + $0x34] ss:$8 sps:$4 sm:$0xff]   ;;  %v1849_v17 = vld [vmem:[%s3347_s0 + $0x40] sm:$0xff]   ;;  %v1866_v18 = vld [vmem:[%s3348_s3 + $0x30] ss:$8 sps:$4 sm:$0xff]  }
   0x7   :  { %1786 = vmatpush3.bf16.msra.mxu0 %v1840_v1  ;;  %1820 = vmatprep.subr.bf16.mxu1 %v1862_v9  ;;  %v1848_v16 = vld [vmem:[%s3347_s0 + $0x38] sm:$0xff]   ;;  %v1871_v19 = vld [vmem:[%s3348_s3 + $0x44] ss:$8 sps:$4 sm:$0xff]   ;;  %v1869_v20 = vld [vmem:[%s3348_s3 + $0x40] ss:$8 sps:$4 sm:$0xff]  }
   0x8   :  { %522 = vmatprep.subr.bf16.mxu0 %v1859_v8  ;;  %v1874_v21 = vld [vmem:[%s3348_s3 + $0x54] ss:$8 sps:$4 sm:$0xff]   ;;  %v1850_v22 = vld [vmem:[%s3347_s0 + $0x48] sm:$0xff]   ;;  %v1872_v24 = vld [vmem:[%s3348_s3 + $0x50] ss:$8 sps:$4 sm:$0xff]  }
   0x9   :  { %v1851_v23 = vld [vmem:[%s3347_s0 + $0x50] sm:$0xff]   ;;  %v1877_v25 = vld [vmem:[%s3348_s3 + $0x64] ss:$8 sps:$4 sm:$0xff]   ;;  %v1875_v26 = vld [vmem:[%s3348_s3 + $0x60] ss:$8 sps:$4 sm:$0xff]  }
   0xa   :  { %1788 = vmatmul.mubr.msk.bf16.vlgmr.msra.gmra.mrb[0].mxu0 %vm156_vm0, %v1842_v3  ;;  %1828 = vmatpush1.bf16.msra.mxu1 %v1860_v12  ;;  %v1852_v27 = vld [vmem:[%s3347_s0 + $0x58] sm:$0xff]   ;;  %v1853_v28 = vld [vmem:[%s3347_s0 + $0x60] sm:$0xff]   ;;  %v1854_v29 = vld [vmem:[%s3347_s0 + $0x68] sm:$0xff]  }
   0xb   :  { %1791 = vmatprep.mubr.msk.bf16.mxu0 %vm156_vm0, %v1843_v4  ;;  %523 = vmatpush1.bf16.msra.mxu0 %v1857_v7  ;;  %v1855_v30 = vld [vmem:[%s3347_s0 + $0x70] sm:$0xff]   ;;  %v1856_v31 = vld [vmem:[%s3347_s0 + $0x78] sm:$0xff]   ;;  %v2294_v35 = vld [vmem:[%s3349_s2] ss:$0 sm:$0xff] }
   0xc   :  { %524 = vmatprep.subr.bf16.mxu0 %v1862_v9  ;;  %1821 = vmatprep.subr.bf16.mxu1 %v1865_v13  ;;  %v1878_v32 = vld [vmem:[%s3348_s3 + $0x70] ss:$8 sps:$4 sm:$0xff]   ;;  %v1880_v33 = vld [vmem:[%s3348_s3 + $0x74] ss:$8 sps:$4 sm:$0xff]  }
   0xe   :  { %1829 = vmatpush1.bf16.msra.mxu1 %v1863_v14 }
   0xf   :  { %525 = vmatpush1.bf16.msra.mxu0 %v1860_v12  ;;  %1822 = vmatprep.subr.bf16.mxu1 %v1868_v15 }
  0x10   :  { %526 = vmatprep.subr.bf16.mxu0 %v1865_v13 }
  0x12   :  { %1792 = vmatmul.mubr.msk.bf16.gmra.mrb[4].mxu0 %vm156_vm0, %v1844_v5  ;;  %1830 = vmatpush1.bf16.msra.mxu1 %v1866_v18 }
  0x13   :  { %1795 = vmatprep.mubr.msk.bf16.mxu0 %vm156_vm0, %v1845_v6  ;;  %527 = vmatpush1.bf16.msra.mxu0 %v1863_v14 }
  0x14   :  { %528 = vmatprep.subr.bf16.mxu0 %v1868_v15  ;;  %1823 = vmatprep.subr.bf16.mxu1 %v1871_v19 }
  0x16   :  { %1831 = vmatpush1.bf16.msra.mxu1 %v1869_v20 }
  0x17   :  { %529 = vmatpush1.bf16.msra.mxu0 %v1866_v18  ;;  %1824 = vmatprep.subr.bf16.mxu1 %v1874_v21 }
  0x18   :  { %530 = vmatprep.subr.bf16.mxu0 %v1871_v19 }
  0x1a   :  { %1796 = vmatmul.mubr.msk.bf16.gmra.mrb[8].mxu0 %vm156_vm0, %v1846_v10  ;;  %1832 = vmatpush1.bf16.msra.mxu1 %v1872_v24 }
  0x1b   :  { %1799 = vmatprep.mubr.msk.bf16.mxu0 %vm156_vm0, %v1847_v11  ;;  %531 = vmatpush1.bf16.msra.mxu0 %v1869_v20 }
  0x1c   :  { %532 = vmatprep.subr.bf16.mxu0 %v1874_v21  ;;  %1825 = vmatprep.subr.bf16.mxu1 %v1877_v25 }
  0x1e   :  { %1833 = vmatpush1.bf16.msra.mxu1 %v1875_v26 }
  0x1f   :  { %533 = vmatpush1.bf16.msra.mxu0 %v1872_v24  ;;  %1826 = vmatprep.subr.bf16.mxu1 %v1880_v33 }
  0x20   :  { %534 = vmatprep.subr.bf16.mxu0 %v1877_v25 }
  0x22   :  { %1800 = vmatmul.mubr.msk.bf16.gmra.mrb[12].mxu0 %vm156_vm0, %v1848_v16  ;;  %1834 = vmatpush1.bf16.msra.mxu1 %v1878_v32 }
  0x23   :  { %1803 = vmatprep.mubr.msk.bf16.mxu0 %vm156_vm0, %v1849_v17  ;;  %535 = vmatpush1.bf16.msra.mxu0 %v1875_v26 }
  0x24   :  { %536 = vmatprep.subr.bf16.mxu0 %v1880_v33 }
  0x27   :  { %537 = vmatpush1.bf16.msra.mxu0 %v1878_v32 }
  0x2a   :  { %1804 = vmatmul.mubr.msk.bf16.gmra.mrb[16].mxu0 %vm156_vm0, %v1850_v22 }
  0x2b   :  { %1807 = vmatprep.mubr.msk.bf16.mxu0 %vm156_vm0, %v1851_v23 }
  0x32   :  { %1808 = vmatmul.mubr.msk.bf16.gmra.mrb[20].mxu0 %vm156_vm0, %v1852_v27 }
  0x33   :  { %1811 = vmatprep.mubr.msk.bf16.mxu0 %vm156_vm0, %v1853_v28 }
  0x3a   :  { %1812 = vmatmul.mubr.msk.bf16.gmra.mrb[24].mxu0 %vm156_vm0, %v1854_v29 }
  0x3b   :  { %1815 = vmatprep.mubr.msk.bf16.mxu0 %vm156_vm0, %v1855_v30 }
  0x42   :  { %1816 = vmatmul.mubr.msk.bf16.gmra.mrb[28].mxu0 %vm156_vm0, %v1856_v31 }
  0x43   :  { %554 = vmatprep.mubr.bf16.mxu0 %v2137_v34 }
  0xdd   :  { %v1789_v36 = vpop.f32.mrb[0].mxu0 }
  0xde   :  { %v248_v37 = vadd.f32 %v1789_v36, %v2294_v35  ;;  %v239_v38 = vpop.f32.mrb[1].mxu0 }
  0xdf   :  { %v240_v39 = vadd.f32 %v2294_v35, %v239_v38  ;;  %v1790_v40 = vpop.f32.mrb[2].mxu0 }
  0xe0   :  { %v251_v41 = vadd.f32 %v1790_v40, %v2294_v35  ;;  %v242_v42 = vpop.f32.mrb[3].mxu0  ;;  %v368_v44 = vmax.f32 %v248_v37, 0.0 }
  0xe1   :  { %v243_v43 = vadd.f32 %v2294_v35, %v242_v42  ;;  %v366_v46 = vmax.f32 %v240_v39, 0.0 }
  0xe2   :  { %v369_v45 = vmax.f32 %v251_v41, 0.0 }
  0xe3   :  { %v367_v47 = vmax.f32 %v243_v43, 0.0 }
  0xe4   :  { %v399_v48 = vpack.c.bf16 %v369_v45, %v368_v44 }
  0xe5   :  { %v398_v49 = vpack.c.bf16 %v367_v47, %v366_v46  ;;  %v1793_v50 = vpop.f32.mrb[4].mxu0 }
  0xe6   :  { %v264_v51 = vadd.f32 %v1793_v50, %v2294_v35  ;;  %v255_v52 = vpop.f32.mrb[5].mxu0 }
  0xe7   :  { %555 = vmatmul.mubr.bf16.vlgmr.msra.gmra.mrb[32].mxu0 %v398_v49  ;;  %v256_v53 = vadd.f32 %v2294_v35, %v255_v52  ;;  %v1794_v54 = vpop.f32.mrb[6].mxu0 }
  0xe8   :  { %v372_v55 = vmax.f32 %v264_v51, 0.0  ;;  %v267_v56 = vadd.f32 %v1794_v54, %v2294_v35  ;;  %v258_v57 = vpop.f32.mrb[7].mxu0  ;;  %564 = vmatprep.mubr.bf16.mxu0 %v2137_v34 }
  0xe9   :  { %v370_v58 = vmax.f32 %v256_v53, 0.0  ;;  %v259_v59 = vadd.f32 %v2294_v35, %v258_v57 }
  0xea   :  { %v373_v60 = vmax.f32 %v267_v56, 0.0 }
  0xeb   :  { %v371_v61 = vmax.f32 %v259_v59, 0.0 }
  0xec   :  { %v401_v62 = vpack.c.bf16 %v373_v60, %v372_v55 }
  0xed   :  { %v400_v63 = vpack.c.bf16 %v371_v61, %v370_v58  ;;  %v1797_v0 = vpop.f32.mrb[8].mxu0 }
  0xee   :  { %v280_v1 = vadd.f32 %v1797_v0, %v2294_v35  ;;  %v271_v2 = vpop.f32.mrb[9].mxu0 }
  0xef   :  { %v272_v3 = vadd.f32 %v2294_v35, %v271_v2  ;;  %565 = vmatmul.mubr.bf16.gmra.mrb[36].mxu0 %v399_v48  ;;  %v1798_v4 = vpop.f32.mrb[10].mxu0 }
  0xf0   :  { %v376_v5 = vmax.f32 %v280_v1, 0.0  ;;  %v283_v6 = vadd.f32 %v1798_v4, %v2294_v35  ;;  %v274_v7 = vpop.f32.mrb[11].mxu0  ;;  %574 = vmatprep.mubr.bf16.mxu0 %v2137_v34 }
  0xf1   :  { %v374_v8 = vmax.f32 %v272_v3, 0.0  ;;  %v275_v9 = vadd.f32 %v2294_v35, %v274_v7 }
  0xf2   :  { %v377_v10 = vmax.f32 %v283_v6, 0.0 }
  0xf3   :  { %v375_v11 = vmax.f32 %v275_v9, 0.0 }
  0xf4   :  { %v403_v12 = vpack.c.bf16 %v377_v10, %v376_v5 }
  0xf5   :  { %v402_v13 = vpack.c.bf16 %v375_v11, %v374_v8  ;;  %v1801_v14 = vpop.f32.mrb[12].mxu0 }
  0xf6   :  { %605 = vmatmul.mubr.bf16.vlgmr.msra.gmra.mrb[0].mxu1 %v403_v12  ;;  %v296_v15 = vadd.f32 %v1801_v14, %v2294_v35  ;;  %v287_v16 = vpop.f32.mrb[13].mxu0 }
  0xf7   :  { %575 = vmatmul.mubr.bf16.gmra.mrb[40].mxu0 %v400_v63  ;;  %v288_v17 = vadd.f32 %v2294_v35, %v287_v16  ;;  %v1802_v18 = vpop.f32.mrb[14].mxu0  ;;  %614 = vmatprep.mubr.bf16.mxu1 %v2137_v34 }
  0xf8   :  { %v380_v19 = vmax.f32 %v296_v15, 0.0  ;;  %v299_v20 = vadd.f32 %v1802_v18, %v2294_v35  ;;  %v290_v21 = vpop.f32.mrb[15].mxu0  ;;  %584 = vmatprep.mubr.bf16.mxu0 %v2137_v34 }
  0xf9   :  { %v378_v22 = vmax.f32 %v288_v17, 0.0  ;;  %v291_v23 = vadd.f32 %v2294_v35, %v290_v21 }
  0xfa   :  { %v381_v24 = vmax.f32 %v299_v20, 0.0 }
  0xfb   :  { %v379_v25 = vmax.f32 %v291_v23, 0.0 }
  0xfc   :  { %v405_v26 = vpack.c.bf16 %v381_v24, %v380_v19  ;;  %v430_v24 = vld [vmem:[%s3350_s4] sm:$0x3]  ;;  %s2138_s4 = smov 127  }
  0xfd   :  { %v404_v27 = vpack.c.bf16 %v379_v25, %v378_v22  ;;  %v1805_v28 = vpop.f32.mrb[16].mxu0 }
  0xfe   :  { %v312_v29 = vadd.f32 %v1805_v28, %v2294_v35  ;;  %v303_v30 = vpop.f32.mrb[17].mxu0 }
  0xff   :  { %585 = vmatmul.mubr.bf16.gmra.mrb[44].mxu0 %v401_v62  ;;  %615 = vmatmul.mubr.bf16.gmra.mrb[4].mxu1 %v404_v27  ;;  %v304_v31 = vadd.f32 %v2294_v35, %v303_v30  ;;  %v1806_v32 = vpop.f32.mrb[18].mxu0 }
 0x100   :  { %594 = vmatprep.mubr.bf16.mxu0 %v2137_v34  ;;  %624 = vmatprep.mubr.bf16.mxu1 %v2137_v34  ;;  %v384_v33 = vmax.f32 %v312_v29, 0.0  ;;  %v315_v36 = vadd.f32 %v1806_v32, %v2294_v35  ;;  %v306_v37 = vpop.f32.mrb[19].mxu0 }
 0x101   :  { %v382_v38 = vmax.f32 %v304_v31, 0.0  ;;  %v307_v39 = vadd.f32 %v2294_v35, %v306_v37 }
 0x102   :  { %v385_v40 = vmax.f32 %v315_v36, 0.0 }
 0x103   :  { %v383_v41 = vmax.f32 %v307_v39, 0.0 }
 0x104   :  { %v407_v42 = vpack.c.bf16 %v385_v40, %v384_v33 }
 0x105   :  { %v406_v43 = vpack.c.bf16 %v383_v41, %v382_v38  ;;  %v1809_v44 = vpop.f32.mrb[20].mxu0 }
 0x106   :  { %v328_v45 = vadd.f32 %v1809_v44, %v2294_v35  ;;  %v319_v46 = vpop.f32.mrb[21].mxu0 }
 0x107   :  { %595 = vmatmul.mubr.bf16.gmra.mrb[48].mxu0 %v402_v13  ;;  %625 = vmatmul.mubr.bf16.gmra.mrb[8].mxu1 %v405_v26  ;;  %v320_v47 = vadd.f32 %v2294_v35, %v319_v46  ;;  %v1810_v48 = vpop.f32.mrb[22].mxu0 }
 0x108   :  { %634 = vmatprep.mubr.bf16.mxu1 %v2137_v34  ;;  %v388_v49 = vmax.f32 %v328_v45, 0.0  ;;  %v331_v50 = vadd.f32 %v1810_v48, %v2294_v35  ;;  %v322_v51 = vpop.f32.mrb[23].mxu0 }
 0x109   :  { %v386_v52 = vmax.f32 %v320_v47, 0.0  ;;  %v323_v53 = vadd.f32 %v2294_v35, %v322_v51 }
 0x10a   :  { %v389_v54 = vmax.f32 %v331_v50, 0.0 }
 0x10b   :  { %v387_v55 = vmax.f32 %v323_v53, 0.0 }
 0x10c   :  { %v409_v56 = vpack.c.bf16 %v389_v54, %v388_v49 }
 0x10d   :  { %v408_v57 = vpack.c.bf16 %v387_v55, %v386_v52  ;;  %v1813_v58 = vpop.f32.mrb[24].mxu0 }
 0x10e   :  { %v344_v59 = vadd.f32 %v1813_v58, %v2294_v35  ;;  %v335_v60 = vpop.f32.mrb[25].mxu0 }
 0x10f   :  { %635 = vmatmul.mubr.bf16.gmra.mrb[12].mxu1 %v406_v43  ;;  %v336_v61 = vadd.f32 %v2294_v35, %v335_v60  ;;  %v1814_v62 = vpop.f32.mrb[26].mxu0 }
 0x110   :  { %644 = vmatprep.mubr.bf16.mxu1 %v2137_v34  ;;  %v392_v63 = vmax.f32 %v344_v59, 0.0  ;;  %v347_v0 = vadd.f32 %v1814_v62, %v2294_v35  ;;  %v338_v1 = vpop.f32.mrb[27].mxu0 }
 0x111   :  { %v390_v2 = vmax.f32 %v336_v61, 0.0  ;;  %v339_v3 = vadd.f32 %v2294_v35, %v338_v1 }
 0x112   :  { %v393_v4 = vmax.f32 %v347_v0, 0.0 }
 0x113   :  { %v391_v5 = vmax.f32 %v339_v3, 0.0 }
 0x114   :  { %v411_v6 = vpack.c.bf16 %v393_v4, %v392_v63 }
 0x115   :  { %v410_v7 = vpack.c.bf16 %v391_v5, %v390_v2  ;;  %v1817_v8 = vpop.f32.mrb[28].mxu0 }
 0x116   :  { %v360_v9 = vadd.f32 %v1817_v8, %v2294_v35  ;;  %v351_v10 = vpop.f32.mrb[29].mxu0 }
 0x117   :  { %645 = vmatmul.mubr.bf16.gmra.mrb[16].mxu1 %v407_v42  ;;  %v352_v11 = vadd.f32 %v2294_v35, %v351_v10  ;;  %v1818_v12 = vpop.f32.mrb[30].mxu0 }
 0x118   :  { %654 = vmatprep.mubr.bf16.mxu1 %v2137_v34  ;;  %v396_v13 = vmax.f32 %v360_v9, 0.0  ;;  %v363_v14 = vadd.f32 %v1818_v12, %v2294_v35  ;;  %v354_v15 = vpop.f32.mrb[31].mxu0 }
 0x119   :  { %v394_v16 = vmax.f32 %v352_v11, 0.0  ;;  %v355_v17 = vadd.f32 %v2294_v35, %v354_v15  ;;  %v3352_v35 = vlaneseq }
 0x11a   :  { %v397_v18 = vmax.f32 %v363_v14, 0.0 }
 0x11b   :  { %v395_v19 = vmax.f32 %v355_v17, 0.0  ;;  %v433_v22 = vshrl.u32 %v3352_v35, 7 }
 0x11c   :  { %v413_v20 = vpack.c.bf16 %v397_v18, %v396_v13 }
 0x11d   :  { %v412_v21 = vpack.c.bf16 %v395_v19, %v394_v16  ;;  %v434_v23 = vsub.s32 0, %v433_v22  ;;  %v438_v26 = vsub.s32 1, %v433_v22 }
 0x11f   :  { %655 = vmatmul.mubr.bf16.gmra.mrb[20].mxu1 %v408_v57  ;;  %v2346_v25 = vrot.slane %v430_v24, %v434_v23  ;;  %v2351_v29 = vrot.slane %v430_v24, %v438_v26 }
 0x120   :  { %664 = vmatprep.mubr.bf16.mxu1 %v2137_v34 }
 0x127   :  { %665 = vmatmul.mubr.bf16.gmra.mrb[24].mxu1 %v409_v56 }
 0x128   :  { %674 = vmatprep.mubr.bf16.mxu1 %v2137_v34 }
 0x12f   :  { %675 = vmatmul.mubr.bf16.gmra.mrb[28].mxu1 %v410_v7 }
 0x130   :  { %684 = vmatprep.mubr.bf16.mxu1 %v2137_v34 }
 0x137   :  { %685 = vmatmul.mubr.bf16.gmra.mrb[32].mxu1 %v411_v6 }
 0x138   :  { %694 = vmatprep.mubr.bf16.mxu1 %v2137_v34 }
 0x13f   :  { %695 = vmatmul.mubr.bf16.gmra.mrb[36].mxu1 %v412_v21 }
 0x140   :  { %704 = vmatprep.mubr.bf16.mxu1 %v2137_v34 }
 0x147   :  { %705 = vmatmul.mubr.bf16.gmra.mrb[40].mxu1 %v413_v20 }
 0x1ba   :  { %v556_v27 = vpop.f32.mrb[32].mxu0 }
 0x1bb   :  { %v2349_v28 = vadd.f32 %v556_v27, %v2346_v25  ;;  %v558_v30 = vpop.f32.mrb[33].mxu0 }
 0x1bc   :  { %v560_v34 = vpop.f32.mrb[34].mxu0  ;;  %v2358_v33 = vadd.f32 %v558_v30, %v2351_v29 }
 0x1bd   :  { %v562_v31 = vpop.f32.mrb[35].mxu0  ;;  %715 = vmax.xlane.f32.xlu0 %v2349_v28  ;;  %v2363_v37 = vadd.f32 %v560_v34, %v2346_v25 }
 0x1be   :  { %v2355_v32 = vadd.f32 %v562_v31, %v2351_v29 }
 0x1c0   :  { %1005 = vmax.xlane.f32.xlu1 %v2355_v32 }
 0x1c1   :  { %1003 = vmax.xlane.f32.xlu0 %v2358_v33 }
 0x1c2   :  { %v566_v36 = vpop.f32.mrb[36].mxu0 }
 0x1c3   :  { %v2366_v38 = vadd.f32 %v566_v36, %v2346_v25  ;;  %v568_v39 = vpop.f32.mrb[37].mxu0 }
 0x1c4   :  { %v570_v40 = vpop.f32.mrb[38].mxu0  ;;  %v2371_v42 = vadd.f32 %v568_v39, %v2351_v29 }
 0x1c5   :  { %v572_v41 = vpop.f32.mrb[39].mxu0  ;;  %719 = vmax.xlane.f32.xlu1 %v2366_v38  ;;  %717 = vmax.xlane.f32.xlu0 %v2363_v37  ;;  %v2374_v43 = vadd.f32 %v570_v40, %v2346_v25 }
 0x1c6   :  { %v2382_v48 = vadd.f32 %v572_v41, %v2351_v29 }
 0x1c9   :  { %721 = vmax.xlane.f32.xlu1 %v2374_v43  ;;  %1007 = vmax.xlane.f32.xlu0 %v2371_v42  ;;  %v606_v44 = vpop.f32.mrb[0].mxu1 }
 0x1ca   :  { %v576_v45 = vpop.f32.mrb[40].mxu0  ;;  %v2379_v46 = vadd.f32 %v606_v44, %v2346_v25  ;;  %v608_v47 = vpop.f32.mrb[1].mxu1 }
 0x1cb   :  { %v578_v49 = vpop.f32.mrb[41].mxu0  ;;  %v610_v50 = vpop.f32.mrb[2].mxu1  ;;  %v2390_v55 = vadd.f32 %v576_v45, %v2346_v25  ;;  %v2398_v59 = vadd.f32 %v608_v47, %v2351_v29 }
 0x1cc   :  { %v580_v51 = vpop.f32.mrb[42].mxu0  ;;  %v612_v52 = vpop.f32.mrb[3].mxu1  ;;  %v2385_v54 = vadd.f32 %v610_v50, %v2346_v25  ;;  %v2403_v2 = vadd.f32 %v578_v49, %v2351_v29 }
 0x1cd   :  { %v582_v53 = vpop.f32.mrb[43].mxu0  ;;  %1009 = vmax.xlane.f32.xlu1 %v2382_v48  ;;  %735 = vmax.xlane.f32.xlu0 %v2379_v46  ;;  %v2395_v58 = vadd.f32 %v580_v51, %v2346_v25  ;;  %v2406_v3 = vadd.f32 %v612_v52, %v2351_v29 }
 0x1ce   :  { %v2411_v6 = vadd.f32 %v582_v53, %v2351_v29 }
 0x1d1   :  { %737 = vmax.xlane.f32.xlu1 %v2385_v54  ;;  %723 = vmax.xlane.f32.xlu0 %v2390_v55 }
 0x1d2   :  { %v586_v56 = vpop.f32.mrb[44].mxu0  ;;  %v616_v57 = vpop.f32.mrb[4].mxu1 }
 0x1d3   :  { %v588_v60 = vpop.f32.mrb[45].mxu0  ;;  %v618_v61 = vpop.f32.mrb[5].mxu1  ;;  %v2414_v7 = vadd.f32 %v586_v56, %v2346_v25  ;;  %v2417_v12 = vadd.f32 %v616_v57, %v2346_v25 }
 0x1d4   :  { %v590_v62 = vpop.f32.mrb[46].mxu0  ;;  %v620_v63 = vpop.f32.mrb[6].mxu1  ;;  %v2430_v18 = vadd.f32 %v588_v60, %v2351_v29  ;;  %v2438_v23 = vadd.f32 %v618_v61, %v2351_v29 }
 0x1d5   :  { %v592_v0 = vpop.f32.mrb[47].mxu0  ;;  %725 = vmax.xlane.f32.xlu1 %v2395_v58  ;;  %1023 = vmax.xlane.f32.xlu0 %v2398_v59  ;;  %v622_v1 = vpop.f32.mrb[7].mxu1  ;;  %v2422_v15 = vadd.f32 %v590_v62, %v2346_v25  ;;  %v2425_v16 = vadd.f32 %v620_v63, %v2346_v25 }
 0x1d6   :  { %v2435_v22 = vadd.f32 %v592_v0, %v2351_v29  ;;  %v2446_v27 = vadd.f32 %v622_v1, %v2351_v29 }
 0x1d9   :  { %1025 = vmax.xlane.f32.xlu1 %v2406_v3  ;;  %1011 = vmax.xlane.f32.xlu0 %v2403_v2 }
 0x1da   :  { %v596_v4 = vpop.f32.mrb[48].mxu0  ;;  %v626_v5 = vpop.f32.mrb[8].mxu1 }
 0x1db   :  { %v598_v8 = vpop.f32.mrb[49].mxu0  ;;  %v628_v9 = vpop.f32.mrb[9].mxu1  ;;  %v2443_v26 = vadd.f32 %v596_v4, %v2346_v25  ;;  %v2454_v39 = vadd.f32 %v626_v5, %v2346_v25 }
 0x1dc   :  { %v600_v10 = vpop.f32.mrb[50].mxu0  ;;  %v630_v11 = vpop.f32.mrb[10].mxu1  ;;  %v2459_v41 = vadd.f32 %v598_v8, %v2351_v29  ;;  %v2470_v51 = vadd.f32 %v628_v9, %v2351_v29 }
 0x1dd   :  { %v602_v13 = vpop.f32.mrb[51].mxu0  ;;  %1013 = vmax.xlane.f32.xlu1 %v2411_v6  ;;  %727 = vmax.xlane.f32.xlu0 %v2414_v7  ;;  %v632_v14 = vpop.f32.mrb[11].mxu1  ;;  %v2451_v36 = vadd.f32 %v600_v10, %v2346_v25  ;;  %v2462_v44 = vadd.f32 %v630_v11, %v2346_v25 }
 0x1de   :  { %v2467_v50 = vadd.f32 %v602_v13, %v2351_v29  ;;  %v2478_v56 = vadd.f32 %v632_v14, %v2351_v29 }
 0x1e1   :  { %729 = vmax.xlane.f32.xlu1 %v2422_v15  ;;  %739 = vmax.xlane.f32.xlu0 %v2417_v12 }
 0x1e2   :  { %v636_v17 = vpop.f32.mrb[12].mxu1 }
 0x1e3   :  { %v638_v19 = vpop.f32.mrb[13].mxu1  ;;  %v2473_v52 = vadd.f32 %v636_v17, %v2346_v25 }
 0x1e4   :  { %v640_v20 = vpop.f32.mrb[14].mxu1  ;;  %v2481_v61 = vadd.f32 %v638_v19, %v2351_v29 }
 0x1e5   :  { %741 = vmax.xlane.f32.xlu1 %v2425_v16  ;;  %1015 = vmax.xlane.f32.xlu0 %v2430_v18  ;;  %v642_v21 = vpop.f32.mrb[15].mxu1  ;;  %v2484_v62 = vadd.f32 %v640_v20, %v2346_v25 }
 0x1e6   :  { %v2491_v1 = vadd.f32 %v642_v21, %v2351_v29 }
 0x1e9   :  { %1017 = vmax.xlane.f32.xlu1 %v2435_v22  ;;  %1027 = vmax.xlane.f32.xlu0 %v2438_v23 }
 0x1ea   :  { %v646_v24 = vpop.f32.mrb[16].mxu1 }
 0x1eb   :  { %v648_v30 = vpop.f32.mrb[17].mxu1  ;;  %v2494_v4 = vadd.f32 %v646_v24, %v2346_v25 }
 0x1ec   :  { %v650_v34 = vpop.f32.mrb[18].mxu1  ;;  %v2499_v10 = vadd.f32 %v648_v30, %v2351_v29 }
 0x1ed   :  { %1029 = vmax.xlane.f32.xlu1 %v2446_v27  ;;  %731 = vmax.xlane.f32.xlu0 %v2443_v26  ;;  %v652_v31 = vpop.f32.mrb[19].mxu1  ;;  %v2502_v11 = vadd.f32 %v650_v34, %v2346_v25 }
 0x1ee   :  { %v2510_v17 = vadd.f32 %v652_v31, %v2351_v29 }
 0x1f0   :  { %3386 = vst [vmem:[#allocation3_spill] sm:$0xff] %v2510_v17 }
 0x1f1   :  { %733 = vmax.xlane.f32.xlu1 %v2451_v36  ;;  %743 = vmax.xlane.f32.xlu0 %v2454_v39 }
 0x1f2   :  { %v656_v40 = vpop.f32.mrb[20].mxu1 }
 0x1f3   :  { %v658_v45 = vpop.f32.mrb[21].mxu1  ;;  %v2505_v13 = vadd.f32 %v656_v40, %v2346_v25 }
 0x1f4   :  { %v660_v47 = vpop.f32.mrb[22].mxu1  ;;  %v2513_v21 = vadd.f32 %v658_v45, %v2351_v29 }
 0x1f5   :  { %745 = vmax.xlane.f32.xlu1 %v2462_v44  ;;  %1019 = vmax.xlane.f32.xlu0 %v2459_v41  ;;  %v662_v49 = vpop.f32.mrb[23].mxu1  ;;  %3385 = vst [vmem:[#allocation2_spill] sm:$0xff] %v2505_v13  ;;  %v2516_v24 = vadd.f32 %v660_v47, %v2346_v25 }
 0x1f6   :  { %3387 = vst [vmem:[#allocation4_spill] sm:$0xff] %v2513_v21  ;;  %v2523_v31 = vadd.f32 %v662_v49, %v2351_v29 }
 0x1f7   :  { %3388 = vst [vmem:[#allocation5_spill] sm:$0xff] %v2516_v24 }
 0x1f8   :  { %3389 = vst [vmem:[#allocation6_spill] sm:$0xff] %v2523_v31 }
 0x1f9   :  { %1021 = vmax.xlane.f32.xlu1 %v2467_v50  ;;  %1031 = vmax.xlane.f32.xlu0 %v2470_v51 }
 0x1fa   :  { %v666_v53 = vpop.f32.mrb[24].mxu1 }
 0x1fb   :  { %v668_v57 = vpop.f32.mrb[25].mxu1  ;;  %v2526_v40 = vadd.f32 %v666_v53, %v2346_v25 }
 0x1fc   :  { %v670_v60 = vpop.f32.mrb[26].mxu1 }
 0x1fd   :  { %1033 = vmax.xlane.f32.xlu1 %v2478_v56  ;;  %747 = vmax.xlane.f32.xlu0 %v2473_v52  ;;  %v672_v63 = vpop.f32.mrb[27].mxu1  ;;  %3390 = vst [vmem:[#allocation7_spill] sm:$0xff] %v2526_v40 }
 0x1fe   :  { %v2542_v53 = vadd.f32 %v672_v63, %v2351_v29 }
 0x201   :  { %749 = vmax.xlane.f32.xlu1 %v2484_v62  ;;  %1035 = vmax.xlane.f32.xlu0 %v2481_v61 }
 0x202   :  { %v676_v0 = vpop.f32.mrb[28].mxu1 }
 0x203   :  { %v678_v5 = vpop.f32.mrb[29].mxu1 }
 0x204   :  { %v680_v8 = vpop.f32.mrb[30].mxu1 }
 0x205   :  { %1037 = vmax.xlane.f32.xlu1 %v2491_v1  ;;  %751 = vmax.xlane.f32.xlu0 %v2494_v4  ;;  %v682_v9 = vpop.f32.mrb[31].mxu1 }
 0x206   :  { %v2555_v63 = vadd.f32 %v682_v9, %v2351_v29 }
 0x209   :  { %753 = vmax.xlane.f32.xlu1 %v2502_v11  ;;  %1039 = vmax.xlane.f32.xlu0 %v2499_v10 }
 0x20a   :  { %v686_v14 = vpop.f32.mrb[32].mxu1 }
 0x20b   :  { %v688_v19 = vpop.f32.mrb[33].mxu1 }
 0x20c   :  { %v690_v20 = vpop.f32.mrb[34].mxu1 }
 0x20d   :  { %1041 = vmax.xlane.f32.xlu1 %v2510_v17  ;;  %755 = vmax.xlane.f32.xlu0 %v2505_v13  ;;  %v692_v30 = vpop.f32.mrb[35].mxu1  ;;  %v2531_v13 = vadd.f32 %v668_v57, %v2351_v29  ;;  %v2545_v17 = vadd.f32 %v678_v5, %v2351_v29  ;;  %v2548_v57 = vadd.f32 %v680_v8, %v2346_v25 }
 0x20e   :  { %v2563_v5 = vadd.f32 %v688_v19, %v2351_v29  ;;  %v2566_v8 = vadd.f32 %v690_v20, %v2346_v25  ;;  %v2574_v9 = vadd.f32 %v692_v30, %v2351_v29 }
 0x20f   :  { %3391 = vst [vmem:[#allocation8_spill] sm:$0xff] %v2548_v57 }
 0x211   :  { %757 = vmax.xlane.f32.xlu1 %v2516_v24  ;;  %1043 = vmax.xlane.f32.xlu0 %v2513_v21  ;;  %v2534_v24 = vadd.f32 %v670_v60, %v2346_v25  ;;  %v2537_v21 = vadd.f32 %v676_v0, %v2346_v25  ;;  %v2558_v0 = vadd.f32 %v686_v14, %v2346_v25 }
 0x212   :  { %v696_v34 = vpop.f32.mrb[36].mxu1 }
 0x213   :  { %v698_v45 = vpop.f32.mrb[37].mxu1  ;;  %3392 = vst [vmem:[#allocation9_spill] sm:$0xff] %v2558_v0 }
 0x214   :  { %v700_v35 = vpop.f32.mrb[38].mxu1  ;;  %v2577_v14 = vadd.f32 %v698_v45, %v2351_v29 }
 0x215   :  { %1045 = vmax.xlane.f32.xlu1 %v2523_v31  ;;  %759 = vmax.xlane.f32.xlu0 %v2526_v40  ;;  %v702_v47 = vpop.f32.mrb[39].mxu1 }
 0x216   :  { %3393 = vst [vmem:[#allocation10_spill] sm:$0xff] %v2577_v14  ;;  %v2587_v19 = vadd.f32 %v702_v47, %v2351_v29 }
 0x218   :  { %3395 = vst [vmem:[#allocation12_spill] sm:$0xff] %v2587_v19 }
 0x219   :  { %761 = vmax.xlane.f32.xlu1 %v2534_v24  ;;  %1047 = vmax.xlane.f32.xlu0 %v2531_v13 }
 0x21a   :  { %v706_v49 = vpop.f32.mrb[40].mxu1 }
 0x21b   :  { %v708_v31 = vpop.f32.mrb[41].mxu1  ;;  %v2590_v20 = vadd.f32 %v706_v49, %v2346_v25 }
 0x21c   :  { %v710_v40 = vpop.f32.mrb[42].mxu1 }
 0x21d   :  { %1049 = vmax.xlane.f32.xlu1 %v2542_v53  ;;  %763 = vmax.xlane.f32.xlu0 %v2537_v21  ;;  %v712_v60 = vpop.f32.mrb[43].mxu1  ;;  %3396 = vst [vmem:[#allocation13_spill] sm:$0xff] %v2590_v20  ;;  %v2598_v30 = vadd.f32 %v710_v40, %v2346_v25 }
 0x21f   :  { %3398 = vst [vmem:[#allocation15_spill] sm:$0xff] %v2598_v30 }
 0x221   :  { %765 = vmax.xlane.f32.xlu1 %v2548_v57  ;;  %1051 = vmax.xlane.f32.xlu0 %v2545_v17  ;;  %v2569_v57 = vadd.f32 %v696_v34, %v2346_v25  ;;  %v2603_v34 = vadd.f32 %v712_v60, %v2351_v29 }
 0x223   :  { %3399 = vst [vmem:[#allocation16_spill] sm:$0xff] %v2603_v34 }
 0x225   :  { %1053 = vmax.xlane.f32.xlu1 %v2555_v63  ;;  %767 = vmax.xlane.f32.xlu0 %v2558_v0  ;;  %v2580_v0 = vadd.f32 %v700_v35, %v2346_v25  ;;  %v2595_v35 = vadd.f32 %v708_v31, %v2351_v29 }
 0x227   :  { %3394 = vst [vmem:[#allocation11_spill] sm:$0xff] %v2580_v0  ;;  %3397 = vst [vmem:[#allocation14_spill] sm:$0xff] %v2595_v35 }
 0x229   :  { %769 = vmax.xlane.f32.xlu1 %v2566_v8  ;;  %1055 = vmax.xlane.f32.xlu0 %v2563_v5 }
 0x22d   :  { %1057 = vmax.xlane.f32.xlu1 %v2574_v9  ;;  %771 = vmax.xlane.f32.xlu0 %v2569_v57 }
 0x231   :  { %773 = vmax.xlane.f32.xlu1 %v2580_v0  ;;  %1059 = vmax.xlane.f32.xlu0 %v2577_v14 }
 0x235   :  { %1061 = vmax.xlane.f32.xlu1 %v2587_v19  ;;  %775 = vmax.xlane.f32.xlu0 %v2590_v20 }
 0x239   :  { %777 = vmax.xlane.f32.xlu1 %v2598_v30  ;;  %1063 = vmax.xlane.f32.xlu0 %v2595_v35 }
 0x23d   :  { %1065 = vmax.xlane.f32.xlu1 %v2603_v34 }
 0x24a   :  { %v716_v45 = vpop.xlane.xlu0 %715 }
 0x24b   :  { %v779_v47 = vsub.f32 %v2349_v28, %v716_v45 }
 0x24d   :  { %v811_v49 = vmul.f32 1.442695, %v779_v47  ;;  %v1006_v20 = vpop.xlane.xlu1 %1005 }
 0x24e   :  { %v1004_v19 = vpop.xlane.xlu0 %1003  ;;  %v1068_v30 = vsub.f32 %v2355_v32, %v1006_v20 }
 0x24f   :  { %1881 = vpow2.f32 %v811_v49  ;;  %v1067_v31 = vsub.f32 %v2358_v33, %v1004_v19 }
 0x250   :  { %v1101_v45 = vmul.f32 1.442695, %v1068_v30 }
 0x251   :  { %v1099_v25 = vmul.f32 1.442695, %v1067_v31 }
 0x252   :  { %v720_v40 = vpop.xlane.xlu1 %719  ;;  %v718_v14 = vpop.xlane.xlu0 %717 }
 0x253   :  { %1883 = vpow2.f32 %v1099_v25  ;;  %v781_v29 = vsub.f32 %v2366_v38, %v720_v40  ;;  %v780_v60 = vsub.f32 %v2363_v37, %v718_v14 }
 0x255   :  { %v815_v34 = vmul.f32 1.442695, %v781_v29  ;;  %v813_v35 = vmul.f32 1.442695, %v780_v60 }
 0x256   :  { %v722_v0 = vpop.xlane.xlu1 %721  ;;  %v1008_v28 = vpop.xlane.xlu0 %1007 }
 0x257   :  { %1885 = vpow2.f32 %v815_v34  ;;  %v782_v47 = vsub.f32 %v2374_v43, %v722_v0  ;;  %v1069_v33 = vsub.f32 %v2371_v42, %v1008_v28 }
 0x258   :  { %1887 = vpow2.f32 %v813_v35 }
 0x259   :  { %v2613_v19 = vpop.eup %1881  ;;  %v1103_v49 = vmul.f32 1.442695, %v1069_v33  ;;  %1889 = vpow2.f32 %v1101_v45  ;;  %v817_v37 = vmul.f32 1.442695, %v782_v47 }
 0x25a   :  { %v1010_v32 = vpop.xlane.xlu1 %1009  ;;  %875 = vadd.xlane.f32.xlu0 %v2613_v19  ;;  %v736_v38 = vpop.xlane.xlu0 %735 }
 0x25b   :  { %v1070_v14 = vsub.f32 %v2382_v48, %v1010_v32  ;;  %v789_v20 = vsub.f32 %v2379_v46, %v736_v38  ;;  %1891 = vpow2.f32 %v1103_v49 }
 0x25c   :  { %1893 = vpow2.f32 %v817_v37 }
 0x25d   :  { %v2618_v30 = vpop.eup %1883  ;;  %v831_v43 = vmul.f32 1.442695, %v789_v20  ;;  %v1105_v35 = vmul.f32 1.442695, %v1070_v14 }
 0x25e   :  { %v738_v0 = vpop.xlane.xlu1 %737  ;;  %1163 = vadd.xlane.f32.xlu0 %v2618_v30  ;;  %v724_v42 = vpop.xlane.xlu0 %723 }
 0x25f   :  { %v790_v34 = vsub.f32 %v2385_v54, %v738_v0  ;;  %v783_v31 = vsub.f32 %v2390_v55, %v724_v42  ;;  %1895 = vpow2.f32 %v831_v43 }
 0x260   :  { %1897 = vpow2.f32 %v1105_v35 }
 0x261   :  { %v2623_v25 = vpop.eup %1885  ;;  %v819_v48 = vmul.f32 1.442695, %v783_v31  ;;  %v833_v60 = vmul.f32 1.442695, %v790_v34 }
 0x262   :  { %v2625_v40 = vpop.eup %1887  ;;  %v726_v46 = vpop.xlane.xlu1 %725  ;;  %879 = vadd.xlane.f32.xlu0 %v2623_v25 }
 0x263   :  { %v1024_v29 = vpop.xlane.xlu0 %1023  ;;  %v784_v28 = vsub.f32 %v2395_v58, %v726_v46  ;;  %877 = vadd.xlane.f32.xlu1 %v2625_v40  ;;  %1899 = vpow2.f32 %v819_v48  ;;  %v2631_v55 = vpop.eup %1889 }
 0x264   :  { %v1077_v54 = vsub.f32 %v2398_v59, %v1024_v29  ;;  %1901 = vpow2.f32 %v833_v60 }
 0x265   :  { %v2633_v47 = vpop.eup %1891  ;;  %v821_v32 = vmul.f32 1.442695, %v784_v28 }
 0x266   :  { %v1119_v45 = vmul.f32 1.442695, %v1077_v54  ;;  %v1026_v33 = vpop.xlane.xlu1 %1025  ;;  %1167 = vadd.xlane.f32.xlu0 %v2633_v47  ;;  %v2639_v59 = vpop.eup %1893 }
 0x267   :  { %v1012_v49 = vpop.xlane.xlu0 %1011  ;;  %v1078_v38 = vsub.f32 %v2406_v3, %v1026_v33  ;;  %1165 = vadd.xlane.f32.xlu1 %v2631_v55 }
 0x268   :  { %v1071_v58 = vsub.f32 %v2403_v2, %v1012_v49  ;;  %1903 = vpow2.f32 %v1119_v45 }
 0x269   :  { %v2641_v14 = vpop.eup %1895  ;;  %1905 = vpow2.f32 %v821_v32  ;;  %v1121_v0 = vmul.f32 1.442695, %v1078_v38 }
 0x26a   :  { %v1107_v37 = vmul.f32 1.442695, %v1071_v58  ;;  %v1014_v20 = vpop.xlane.xlu1 %1013  ;;  %895 = vadd.xlane.f32.xlu0 %v2641_v14  ;;  %v2647_v2 = vpop.eup %1897 }
 0x26b   :  { %v728_v43 = vpop.xlane.xlu0 %727  ;;  %v1072_v42 = vsub.f32 %v2411_v6, %v1014_v20  ;;  %881 = vadd.xlane.f32.xlu1 %v2639_v59 }
 0x26c   :  { %v785_v3 = vsub.f32 %v2414_v7, %v728_v43  ;;  %1907 = vpow2.f32 %v1107_v37 }
 0x26d   :  { %v2649_v34 = vpop.eup %1899  ;;  %1909 = vpow2.f32 %v1121_v0  ;;  %v1109_v46 = vmul.f32 1.442695, %v1072_v42 }
 0x26e   :  { %v823_v35 = vmul.f32 1.442695, %v785_v3  ;;  %v730_v31 = vpop.xlane.xlu1 %729  ;;  %883 = vadd.xlane.f32.xlu0 %v2649_v34  ;;  %v2655_v7 = vpop.eup %1901 }
 0x26f   :  { %v740_v48 = vpop.xlane.xlu0 %739  ;;  %v786_v29 = vsub.f32 %v2422_v15, %v730_v31  ;;  %1169 = vadd.xlane.f32.xlu1 %v2647_v2 }
 0x270   :  { %v791_v6 = vsub.f32 %v2417_v12, %v740_v48  ;;  %1911 = vpow2.f32 %v823_v35 }
 0x271   :  { %1913 = vpow2.f32 %v1109_v46  ;;  %v825_v33 = vmul.f32 1.442695, %v786_v29 }
 0x272   :  { %v835_v60 = vmul.f32 1.442695, %v791_v6  ;;  %v2657_v28 = vpop.eup %1903  ;;  %v742_v54 = vpop.xlane.xlu1 %741 }
 0x273   :  { %v1016_v45 = vpop.xlane.xlu0 %1015  ;;  %v792_v49 = vsub.f32 %v2425_v16, %v742_v54  ;;  %897 = vadd.xlane.f32.xlu1 %v2655_v7  ;;  %1183 = vadd.xlane.f32.xlu0 %v2657_v28  ;;  %v2663_v12 = vpop.eup %1905 }
 0x274   :  { %v1073_v15 = vsub.f32 %v2430_v18, %v1016_v45  ;;  %1915 = vpow2.f32 %v835_v60 }
 0x275   :  { %1917 = vpow2.f32 %v825_v33  ;;  %v837_v20 = vmul.f32 1.442695, %v792_v49 }
 0x276   :  { %v1111_v32 = vmul.f32 1.442695, %v1073_v15  ;;  %v2665_v38 = vpop.eup %1907  ;;  %v1018_v58 = vpop.xlane.xlu1 %1017 }
 0x277   :  { %v1028_v37 = vpop.xlane.xlu0 %1027  ;;  %v1074_v43 = vsub.f32 %v2435_v22, %v1018_v58  ;;  %885 = vadd.xlane.f32.xlu1 %v2663_v12  ;;  %1171 = vadd.xlane.f32.xlu0 %v2665_v38  ;;  %v2671_v18 = vpop.eup %1909 }
 0x278   :  { %v1079_v16 = vsub.f32 %v2438_v23, %v1028_v37  ;;  %1919 = vpow2.f32 %v1111_v32 }
 0x279   :  { %1921 = vpow2.f32 %v837_v20  ;;  %v1113_v31 = vmul.f32 1.442695, %v1074_v43 }
 0x27a   :  { %v1123_v0 = vmul.f32 1.442695, %v1079_v16  ;;  %v2673_v42 = vpop.eup %1911  ;;  %v1030_v3 = vpop.xlane.xlu1 %1029 }
 0x27b   :  { %v732_v35 = vpop.xlane.xlu0 %731  ;;  %v1080_v48 = vsub.f32 %v2446_v27, %v1030_v3  ;;  %1185 = vadd.xlane.f32.xlu1 %v2671_v18  ;;  %887 = vadd.xlane.f32.xlu0 %v2673_v42  ;;  %v2679_v23 = vpop.eup %1913 }
 0x27c   :  { %v787_v22 = vsub.f32 %v2443_v26, %v732_v35  ;;  %1923 = vpow2.f32 %v1123_v0 }
 0x27d   :  { %1925 = vpow2.f32 %v1113_v31  ;;  %v1125_v54 = vmul.f32 1.442695, %v1080_v48 }
 0x27e   :  { %v827_v46 = vmul.f32 1.442695, %v787_v22  ;;  %v2681_v29 = vpop.eup %1915  ;;  %v734_v6 = vpop.xlane.xlu1 %733 }
 0x27f   :  { %v744_v60 = vpop.xlane.xlu0 %743  ;;  %v788_v45 = vsub.f32 %v2451_v36, %v734_v6  ;;  %1173 = vadd.xlane.f32.xlu1 %v2679_v23  ;;  %899 = vadd.xlane.f32.xlu0 %v2681_v29  ;;  %v2687_v26 = vpop.eup %1917 }
 0x280   :  { %v793_v27 = vsub.f32 %v2454_v39, %v744_v60  ;;  %1927 = vpow2.f32 %v827_v46 }
 0x281   :  { %1929 = vpow2.f32 %v1125_v54  ;;  %v829_v58 = vmul.f32 1.442695, %v788_v45 }
 0x282   :  { %v839_v33 = vmul.f32 1.442695, %v793_v27  ;;  %v2689_v49 = vpop.eup %1919  ;;  %v746_v15 = vpop.xlane.xlu1 %745 }
 0x283   :  { %v1020_v32 = vpop.xlane.xlu0 %1019  ;;  %v794_v37 = vsub.f32 %v2462_v44, %v746_v15  ;;  %889 = vadd.xlane.f32.xlu1 %v2687_v26  ;;  %1175 = vadd.xlane.f32.xlu0 %v2689_v49  ;;  %v2695_v39 = vpop.eup %1921 }
 0x284   :  { %v1075_v36 = vsub.f32 %v2459_v41, %v1020_v32  ;;  %1931 = vpow2.f32 %v839_v33 }
 0x285   :  { %1933 = vpow2.f32 %v829_v58  ;;  %v841_v3 = vmul.f32 1.442695, %v794_v37 }
 0x286   :  { %v1115_v20 = vmul.f32 1.442695, %v1075_v36  ;;  %v2697_v43 = vpop.eup %1923  ;;  %v1022_v16 = vpop.xlane.xlu1 %1021 }
 0x287   :  { %v1032_v0 = vpop.xlane.xlu0 %1031  ;;  %v1076_v35 = vsub.f32 %v2467_v50, %v1022_v16  ;;  %901 = vadd.xlane.f32.xlu1 %v2695_v39  ;;  %1187 = vadd.xlane.f32.xlu0 %v2697_v43  ;;  %v2703_v41 = vpop.eup %1925 }
 0x288   :  { %v1081_v44 = vsub.f32 %v2470_v51, %v1032_v0  ;;  %1935 = vpow2.f32 %v1115_v20 }
 0x289   :  { %1937 = vpow2.f32 %v841_v3  ;;  %v1117_v6 = vmul.f32 1.442695, %v1076_v35 }
 0x28a   :  { %v1127_v31 = vmul.f32 1.442695, %v1081_v44  ;;  %v2705_v48 = vpop.eup %1927  ;;  %v1034_v22 = vpop.xlane.xlu1 %1033 }
 0x28b   :  { %v748_v46 = vpop.xlane.xlu0 %747  ;;  %v1082_v60 = vsub.f32 %v2478_v56, %v1034_v22  ;;  %1177 = vadd.xlane.f32.xlu1 %v2703_v41  ;;  %891 = vadd.xlane.f32.xlu0 %v2705_v48  ;;  %v2711_v51 = vpop.eup %1929 }
 0x28c   :  { %v795_v50 = vsub.f32 %v2473_v52, %v748_v46  ;;  %1939 = vpow2.f32 %v1127_v31 }
 0x28d   :  { %1941 = vpow2.f32 %v1117_v6  ;;  %v1129_v15 = vmul.f32 1.442695, %v1082_v60 }
 0x28e   :  { %v843_v54 = vmul.f32 1.442695, %v795_v50  ;;  %v2713_v45 = vpop.eup %1931  ;;  %v750_v27 = vpop.xlane.xlu1 %749 }
 0x28f   :  { %v1036_v33 = vpop.xlane.xlu0 %1035  ;;  %v796_v32 = vsub.f32 %v2484_v62, %v750_v27  ;;  %1189 = vadd.xlane.f32.xlu1 %v2711_v51  ;;  %903 = vadd.xlane.f32.xlu0 %v2713_v45  ;;  %v2719_v52 = vpop.eup %1933 }
 0x290   :  { %v1083_v56 = vsub.f32 %v2481_v61, %v1036_v33  ;;  %1943 = vpow2.f32 %v843_v54  ;;  %v3400_v33 = vld [vmem:[#allocation3_spill] sm:$0xff] }
 0x291   :  { %1945 = vpow2.f32 %v1129_v15  ;;  %v845_v16 = vmul.f32 1.442695, %v796_v32 }
 0x292   :  { %v1131_v58 = vmul.f32 1.442695, %v1083_v56  ;;  %v2721_v37 = vpop.eup %1935  ;;  %v1038_v36 = vpop.xlane.xlu1 %1037 }
 0x293   :  { %v752_v20 = vpop.xlane.xlu0 %751  ;;  %v1084_v0 = vsub.f32 %v2491_v1, %v1038_v36  ;;  %893 = vadd.xlane.f32.xlu1 %v2719_v52  ;;  %1179 = vadd.xlane.f32.xlu0 %v2721_v37  ;;  %v2727_v61 = vpop.eup %1937 }
 0x294   :  { %v797_v62 = vsub.f32 %v2494_v4, %v752_v20  ;;  %1947 = vpow2.f32 %v1131_v58 }
 0x295   :  { %1949 = vpow2.f32 %v845_v16  ;;  %v1133_v22 = vmul.f32 1.442695, %v1084_v0  ;;  %v3404_v0 = vld [vmem:[#allocation5_spill] sm:$0xff] }
 0x296   :  { %v847_v3 = vmul.f32 1.442695, %v797_v62  ;;  %v2729_v35 = vpop.eup %1939  ;;  %v754_v44 = vpop.xlane.xlu1 %753 }
 0x297   :  { %v1040_v31 = vpop.xlane.xlu0 %1039  ;;  %v798_v46 = vsub.f32 %v2502_v11, %v754_v44  ;;  %905 = vadd.xlane.f32.xlu1 %v2727_v61  ;;  %1191 = vadd.xlane.f32.xlu0 %v2729_v35  ;;  %v2735_v4 = vpop.eup %1941  ;;  %v3401_v11 = vld [vmem:[#allocation2_spill] sm:$0xff] }
 0x298   :  { %v1085_v1 = vsub.f32 %v2499_v10, %v1040_v31  ;;  %1951 = vpow2.f32 %v847_v3  ;;  %v3405_v3 = vld [vmem:[#allocation4_spill] sm:$0xff] }
 0x299   :  { %1953 = vpow2.f32 %v1133_v22  ;;  %v849_v27 = vmul.f32 1.442695, %v798_v46 }
 0x29a   :  { %v1135_v6 = vmul.f32 1.442695, %v1085_v1  ;;  %v2737_v60 = vpop.eup %1943  ;;  %v1042_v50 = vpop.xlane.xlu1 %1041 }
 0x29b   :  { %v756_v54 = vpop.xlane.xlu0 %755  ;;  %v1086_v15 = vsub.f32 %v3400_v33, %v1042_v50  ;;  %1181 = vadd.xlane.f32.xlu1 %v2735_v4  ;;  %907 = vadd.xlane.f32.xlu0 %v2737_v60  ;;  %v2743_v10 = vpop.eup %1945  ;;  %v3407_v33 = vld [vmem:[#allocation7_spill] sm:$0xff] }
 0x29c   :  { %v799_v32 = vsub.f32 %v3401_v11, %v756_v54  ;;  %1955 = vpow2.f32 %v1135_v6  ;;  %3402 = vst [vmem:[#allocation3_spill] sm:$0xff] %v2743_v10  ;;  %v3406_v54 = vld [vmem:[#allocation6_spill] sm:$0xff] }
 0x29d   :  { %1957 = vpow2.f32 %v849_v27  ;;  %v1137_v16 = vmul.f32 1.442695, %v1086_v15 }
 0x29e   :  { %v851_v56 = vmul.f32 1.442695, %v799_v32  ;;  %v2745_v58 = vpop.eup %1947  ;;  %v758_v36 = vpop.xlane.xlu1 %757 }
 0x29f   :  { %3403 = vst [vmem:[#allocation2_spill] sm:$0xff] %v2745_v58  ;;  %v1044_v20 = vpop.xlane.xlu0 %1043  ;;  %v800_v62 = vsub.f32 %v3404_v0, %v758_v36  ;;  %1193 = vadd.xlane.f32.xlu1 %v2743_v10  ;;  %1195 = vadd.xlane.f32.xlu0 %v2745_v58  ;;  %v2751_v31 = vpop.eup %1949 }
 0x2a0   :  { %v1087_v44 = vsub.f32 %v3405_v3, %v1044_v20  ;;  %1959 = vpow2.f32 %v851_v56 }
 0x2a1   :  { %1961 = vpow2.f32 %v1137_v16  ;;  %v853_v50 = vmul.f32 1.442695, %v800_v62 }
 0x2a2   :  { %v1139_v22 = vmul.f32 1.442695, %v1087_v44  ;;  %v2753_v46 = vpop.eup %1951  ;;  %v1046_v1 = vpop.xlane.xlu1 %1045 }
 0x2a3   :  { %v760_v6 = vpop.xlane.xlu0 %759  ;;  %v1088_v27 = vsub.f32 %v3406_v54, %v1046_v1  ;;  %909 = vadd.xlane.f32.xlu1 %v2751_v31  ;;  %911 = vadd.xlane.f32.xlu0 %v2753_v46  ;;  %v2759_v11 = vpop.eup %1953 }
 0x2a4   :  { %v801_v15 = vsub.f32 %v3407_v33, %v760_v6  ;;  %1963 = vpow2.f32 %v1139_v22  ;;  %3408 = vst [vmem:[#allocation5_spill] sm:$0xff] %v2759_v11 }
 0x2a5   :  { %1965 = vpow2.f32 %v853_v50  ;;  %v1141_v0 = vmul.f32 1.442695, %v1088_v27 }
 0x2a6   :  { %v855_v32 = vmul.f32 1.442695, %v801_v15  ;;  %v2761_v56 = vpop.eup %1955  ;;  %v762_v36 = vpop.xlane.xlu1 %761 }
 0x2a7   :  { %3409 = vst [vmem:[#allocation4_spill] sm:$0xff] %v2761_v56  ;;  %v1048_v20 = vpop.xlane.xlu0 %1047  ;;  %v802_v16 = vsub.f32 %v2534_v24, %v762_v36  ;;  %1197 = vadd.xlane.f32.xlu1 %v2759_v11  ;;  %1199 = vadd.xlane.f32.xlu0 %v2761_v56  ;;  %v2767_v3 = vpop.eup %1957 }
 0x2a8   :  { %v1089_v62 = vsub.f32 %v2531_v13, %v1048_v20  ;;  %1967 = vpow2.f32 %v855_v32  ;;  %v3412_v20 = vld [vmem:[#allocation8_spill] sm:$0xff] }
 0x2a9   :  { %1969 = vpow2.f32 %v1141_v0  ;;  %v857_v54 = vmul.f32 1.442695, %v802_v16 }
 0x2aa   :  { %v1143_v44 = vmul.f32 1.442695, %v1089_v62  ;;  %v2769_v22 = vpop.eup %1959  ;;  %v1050_v1 = vpop.xlane.xlu1 %1049 }
 0x2ab   :  { %v764_v6 = vpop.xlane.xlu0 %763  ;;  %v1090_v50 = vsub.f32 %v2542_v53, %v1050_v1  ;;  %913 = vadd.xlane.f32.xlu1 %v2767_v3  ;;  %915 = vadd.xlane.f32.xlu0 %v2769_v22  ;;  %v2775_v13 = vpop.eup %1961 }
 0x2ac   :  { %v803_v24 = vsub.f32 %v2537_v21, %v764_v6  ;;  %1971 = vpow2.f32 %v1143_v44  ;;  %3410 = vst [vmem:[#allocation6_spill] sm:$0xff] %v2775_v13 }
 0x2ad   :  { %1973 = vpow2.f32 %v857_v54  ;;  %v1145_v36 = vmul.f32 1.442695, %v1090_v50  ;;  %v3413_v50 = vld [vmem:[#allocation9_spill] sm:$0xff] }
 0x2ae   :  { %v859_v27 = vmul.f32 1.442695, %v803_v24  ;;  %v2777_v33 = vpop.eup %1963  ;;  %v766_v15 = vpop.xlane.xlu1 %765 }
 0x2af   :  { %3411 = vst [vmem:[#allocation7_spill] sm:$0xff] %v2777_v33  ;;  %v1052_v32 = vpop.xlane.xlu0 %1051  ;;  %v804_v0 = vsub.f32 %v3412_v20, %v766_v15  ;;  %1201 = vadd.xlane.f32.xlu1 %v2775_v13  ;;  %1203 = vadd.xlane.f32.xlu0 %v2777_v33  ;;  %v2783_v21 = vpop.eup %1965 }
 0x2b0   :  { %v1091_v53 = vsub.f32 %v2545_v17, %v1052_v32  ;;  %1975 = vpow2.f32 %v859_v27 }
 0x2b1   :  { %1977 = vpow2.f32 %v1145_v36  ;;  %v861_v6 = vmul.f32 1.442695, %v804_v0 }
 0x2b2   :  { %v1147_v16 = vmul.f32 1.442695, %v1091_v53  ;;  %v2785_v62 = vpop.eup %1967  ;;  %v1054_v44 = vpop.xlane.xlu1 %1053 }
 0x2b3   :  { %v768_v1 = vpop.xlane.xlu0 %767  ;;  %v1092_v54 = vsub.f32 %v2555_v63, %v1054_v44  ;;  %917 = vadd.xlane.f32.xlu1 %v2783_v21  ;;  %919 = vadd.xlane.f32.xlu0 %v2785_v62  ;;  %v2791_v17 = vpop.eup %1969 }
 0x2b4   :  { %v805_v24 = vsub.f32 %v3413_v50, %v768_v1  ;;  %1979 = vpow2.f32 %v1147_v16  ;;  %3414 = vst [vmem:[#allocation8_spill] sm:$0xff] %v2791_v17 }
 0x2b5   :  { %1981 = vpow2.f32 %v861_v6  ;;  %v1149_v53 = vmul.f32 1.442695, %v1092_v54 }
 0x2b6   :  { %v863_v27 = vmul.f32 1.442695, %v805_v24  ;;  %v2793_v15 = vpop.eup %1971  ;;  %v770_v32 = vpop.xlane.xlu1 %769 }
 0x2b7   :  { %3415 = vst [vmem:[#allocation9_spill] sm:$0xff] %v2793_v15  ;;  %v1056_v20 = vpop.xlane.xlu0 %1055  ;;  %v806_v36 = vsub.f32 %v2566_v8, %v770_v32  ;;  %1205 = vadd.xlane.f32.xlu1 %v2791_v17  ;;  %1207 = vadd.xlane.f32.xlu0 %v2793_v15  ;;  %v2799_v0 = vpop.eup %1973 }
 0x2b8   :  { %v1093_v63 = vsub.f32 %v2563_v5, %v1056_v20  ;;  %1983 = vpow2.f32 %v863_v27 }
 0x2b9   :  { %1985 = vpow2.f32 %v1149_v53  ;;  %v865_v24 = vmul.f32 1.442695, %v806_v36  ;;  %v3418_v53 = vld [vmem:[#allocation11_spill] sm:$0xff] }
 0x2ba   :  { %v1151_v16 = vmul.f32 1.442695, %v1093_v63  ;;  %v2801_v44 = vpop.eup %1975  ;;  %v1058_v1 = vpop.xlane.xlu1 %1057 }
 0x2bb   :  { %v772_v50 = vpop.xlane.xlu0 %771  ;;  %v1094_v6 = vsub.f32 %v2574_v9, %v1058_v1  ;;  %921 = vadd.xlane.f32.xlu1 %v2799_v0  ;;  %923 = vadd.xlane.f32.xlu0 %v2801_v44  ;;  %v2807_v5 = vpop.eup %1977  ;;  %v3419_v9 = vld [vmem:[#allocation10_spill] sm:$0xff] }
 0x2bc   :  { %v807_v8 = vsub.f32 %v2569_v57, %v772_v50  ;;  %1987 = vpow2.f32 %v1151_v16  ;;  %3416 = vst [vmem:[#allocation17_spill] sm:$0xff] %v2807_v5 }
 0x2bd   :  { %1989 = vpow2.f32 %v865_v24  ;;  %v1153_v63 = vmul.f32 1.442695, %v1094_v6  ;;  %v3420_v24 = vld [vmem:[#allocation12_spill] sm:$0xff] }
 0x2be   :  { %v867_v54 = vmul.f32 1.442695, %v807_v8  ;;  %v2809_v27 = vpop.eup %1979  ;;  %v774_v32 = vpop.xlane.xlu1 %773 }
 0x2bf   :  { %3417 = vst [vmem:[#allocation18_spill] sm:$0xff] %v2809_v27  ;;  %v1060_v20 = vpop.xlane.xlu0 %1059  ;;  %v808_v36 = vsub.f32 %v3418_v53, %v774_v32  ;;  %1209 = vadd.xlane.f32.xlu1 %v2807_v5  ;;  %1211 = vadd.xlane.f32.xlu0 %v2809_v27  ;;  %v2815_v57 = vpop.eup %1981  ;;  %v3421_v32 = vld [vmem:[#allocation13_spill] sm:$0xff] }
 0x2c0   :  { %v1095_v1 = vsub.f32 %v3419_v9, %v1060_v20  ;;  %1991 = vpow2.f32 %v867_v54 }
 0x2c1   :  { %1993 = vpow2.f32 %v1153_v63  ;;  %v869_v17 = vmul.f32 1.442695, %v808_v36  ;;  %v3424_v63 = vld [vmem:[#allocation14_spill] sm:$0xff] }
 0x2c2   :  { %v1155_v16 = vmul.f32 1.442695, %v1095_v1  ;;  %v2817_v50 = vpop.eup %1983  ;;  %v1062_v8 = vpop.xlane.xlu1 %1061 }
 0x2c3   :  { %v776_v15 = vpop.xlane.xlu0 %775  ;;  %v1096_v6 = vsub.f32 %v3420_v24, %v1062_v8  ;;  %925 = vadd.xlane.f32.xlu1 %v2815_v57  ;;  %927 = vadd.xlane.f32.xlu0 %v2817_v50  ;;  %v2823_v20 = vpop.eup %1985  ;;  %v3425_v8 = vld [vmem:[#allocation15_spill] sm:$0xff] }
 0x2c4   :  { %v809_v53 = vsub.f32 %v3421_v32, %v776_v15  ;;  %1995 = vpow2.f32 %v1155_v16  ;;  %3422 = vst [vmem:[#allocation11_spill] sm:$0xff] %v2823_v20 }
 0x2c5   :  { %1997 = vpow2.f32 %v869_v17  ;;  %v1157_v5 = vmul.f32 1.442695, %v1096_v6  ;;  %v3426_v6 = vld [vmem:[#allocation16_spill] sm:$0xff] }
 0x2c6   :  { %v871_v54 = vmul.f32 1.442695, %v809_v53  ;;  %v2825_v9 = vpop.eup %1987  ;;  %v778_v1 = vpop.xlane.xlu1 %777 }
 0x2c7   :  { %3423 = vst [vmem:[#allocation10_spill] sm:$0xff] %v2825_v9  ;;  %v1064_v27 = vpop.xlane.xlu0 %1063  ;;  %1213 = vadd.xlane.f32.xlu1 %v2823_v20  ;;  %1215 = vadd.xlane.f32.xlu0 %v2825_v9  ;;  %v810_v24 = vsub.f32 %v3425_v8, %v778_v1  ;;  %v2831_v15 = vpop.eup %1989 }
 0x2c8   :  { %v1097_v36 = vsub.f32 %v3424_v63, %v1064_v27  ;;  %1999 = vpow2.f32 %v871_v54 }
 0x2c9   :  { %2001 = vpow2.f32 %v1157_v5  ;;  %v873_v17 = vmul.f32 1.442695, %v810_v24 }
 0x2ca   :  { %v1159_v16 = vmul.f32 1.442695, %v1097_v36  ;;  %v2833_v32 = vpop.eup %1991  ;;  %v1066_v53 = vpop.xlane.xlu1 %1065 }
 0x2cb   :  { %929 = vadd.xlane.f32.xlu1 %v2831_v15  ;;  %931 = vadd.xlane.f32.xlu0 %v2833_v32  ;;  %v1098_v9 = vsub.f32 %v3426_v6, %v1066_v53  ;;  %v2838_v20 = vpop.eup %1993 }
 0x2cc   :  { %2003 = vpow2.f32 %v1159_v16  ;;  %3427 = vst [vmem:[#allocation12_spill] sm:$0xff] %v2838_v20 }
 0x2cd   :  { %2005 = vpow2.f32 %v873_v17  ;;  %v1161_v54 = vmul.f32 1.442695, %v1098_v9 }
 0x2ce   :  { %v2840_v27 = vpop.eup %1995 }
 0x2cf   :  { %3428 = vst [vmem:[#allocation13_spill] sm:$0xff] %v2840_v27  ;;  %1217 = vadd.xlane.f32.xlu1 %v2838_v20  ;;  %1219 = vadd.xlane.f32.xlu0 %v2840_v27  ;;  %v2844_v1 = vpop.eup %1997  ;;  %2007 = vpow2.f32 %v1161_v54 }
 0x2d2   :  { %v2846_v5 = vpop.eup %1999 }
 0x2d3   :  { %933 = vadd.xlane.f32.xlu1 %v2844_v1  ;;  %935 = vadd.xlane.f32.xlu0 %v2846_v5  ;;  %v2850_v63 = vpop.eup %2001 }
 0x2d4   :  { %3429 = vst [vmem:[#allocation14_spill] sm:$0xff] %v2850_v63 }
 0x2d6   :  { %v2852_v36 = vpop.eup %2003 }
 0x2d7   :  { %3430 = vst [vmem:[#allocation15_spill] sm:$0xff] %v2852_v36  ;;  %1221 = vadd.xlane.f32.xlu1 %v2850_v63  ;;  %1223 = vadd.xlane.f32.xlu0 %v2852_v36  ;;  %v2856_v8 = vpop.eup %2005 }
 0x2d9   :  { %v2859_v9 = vpop.eup %2007 }
 0x2da   :  { %3431 = vst [vmem:[#allocation16_spill] sm:$0xff] %v2859_v9 }
 0x2db   :  { %937 = vadd.xlane.f32.xlu1 %v2856_v8 }
 0x2df   :  { %1225 = vadd.xlane.f32.xlu1 %v2859_v9 }
 0x2e7   :  { %v876_v24 = vpop.xlane.xlu0 %875 }
 0x2e8   :  { %2009 = vrcp.f32 %v876_v24 }
 0x2eb   :  { %v2862_v16 = vpop.xlane.xlu0 %1163 }
 0x2ef   :  { %v880_v53 = vpop.xlane.xlu0 %879 }
 0x2f0   :  { %v878_v17 = vpop.xlane.xlu1 %877  ;;  %2011 = vrcp.f32 %v880_v53 }
 0x2f1   :  { %2013 = vrcp.f32 %v878_v17 }
 0x2f2   :  { %v2010_v6 = vpop.eup %2009 }
 0x2f3   :  { %v971_v54 = vmul.f32 %v2010_v6, %v2613_v19  ;;  %v2867_v63 = vpop.xlane.xlu0 %1167 }
 0x2f4   :  { %v2865_v36 = vpop.xlane.xlu1 %1165 }
 0x2f5   :  { %v1291_v27 = vmul.f32 2.0, %v971_v54 }
 0x2f7   :  { %1355 = vrot.lane.b32.xlu0 %v1291_v27, %s2138_s4  ;;  %v896_v20 = vpop.xlane.xlu0 %895 }
 0x2f8   :  { %v882_v9 = vpop.xlane.xlu1 %881 }
 0x2f9   :  { %2015 = vrcp.f32 %v882_v9 }
 0x2fa   :  { %v2012_v24 = vpop.eup %2011  ;;  %2017 = vrcp.f32 %v896_v20 }
 0x2fb   :  { %v2014_v33 = vpop.eup %2013  ;;  %v884_v53 = vpop.xlane.xlu0 %883  ;;  %v973_v6 = vmul.f32 %v2012_v24, %v2623_v25 }
 0x2fc   :  { %v2870_v13 = vpop.xlane.xlu1 %1169  ;;  %v972_v17 = vmul.f32 %v2014_v33, %v2625_v40  ;;  %2019 = vrcp.f32 %v884_v53 }
 0x2fd   :  { %v1293_v27 = vmul.f32 2.0, %v973_v6 }
 0x2fe   :  { %v1292_v19 = vmul.f32 2.0, %v972_v17 }
 0x300   :  { %1357 = vrot.lane.b32.xlu1 %v1292_v19, %s2138_s4  ;;  %v898_v54 = vpop.xlane.xlu1 %897  ;;  %v2875_v56 = vpop.xlane.xlu0 %1183 }
 0x301   :  { %2021 = vrcp.f32 %v898_v54 }
 0x303   :  { %v2016_v9 = vpop.eup %2015 }
 0x304   :  { %v2018_v11 = vpop.eup %2017  ;;  %v886_v20 = vpop.xlane.xlu1 %885  ;;  %1359 = vrot.lane.b32.xlu1 %v1293_v27, %s2138_s4  ;;  %v974_v40 = vmul.f32 %v2016_v9, %v2639_v59 }
 0x305   :  { %v2878_v58 = vpop.xlane.xlu0 %1171  ;;  %2023 = vrcp.f32 %v886_v20  ;;  %v981_v33 = vmul.f32 %v2018_v11, %v2641_v14 }
 0x306   :  { %v1294_v25 = vmul.f32 2.0, %v974_v40  ;;  %v2020_v53 = vpop.eup %2019 }
 0x307   :  { %v1301_v24 = vmul.f32 2.0, %v981_v33  ;;  %v975_v6 = vmul.f32 %v2020_v53, %v2649_v34 }
 0x308   :  { %v2882_v17 = vpop.xlane.xlu1 %1185  ;;  %1361 = vrot.lane.b32.xlu1 %v1294_v25, %s2138_s4 }
 0x309   :  { %v888_v19 = vpop.xlane.xlu0 %887  ;;  %1375 = vrot.lane.b32.xlu0 %v1301_v24, %s2138_s4  ;;  %v1295_v27 = vmul.f32 2.0, %v975_v6 }
 0x30a   :  { %2025 = vrcp.f32 %v888_v19 }
 0x30b   :  { %v2022_v54 = vpop.eup %2021 }
 0x30c   :  { %v2887_v10 = vpop.xlane.xlu1 %1173  ;;  %v982_v14 = vmul.f32 %v2022_v54, %v2655_v7 }
 0x30d   :  { %v900_v59 = vpop.xlane.xlu0 %899  ;;  %1363 = vrot.lane.b32.xlu0 %v1295_v27, %s2138_s4 }
 0x30e   :  { %2027 = vrcp.f32 %v900_v59  ;;  %v1302_v11 = vmul.f32 2.0, %v982_v14 }
 0x30f   :  { %v2024_v9 = vpop.eup %2023 }
 0x310   :  { %v890_v20 = vpop.xlane.xlu1 %889  ;;  %1377 = vrot.lane.b32.xlu1 %v1302_v11, %s2138_s4  ;;  %v976_v34 = vmul.f32 %v2024_v9, %v2663_v12 }
 0x311   :  { %v2892_v40 = vpop.xlane.xlu0 %1175  ;;  %2029 = vrcp.f32 %v890_v20 }
 0x312   :  { %v1296_v33 = vmul.f32 2.0, %v976_v34 }
 0x314   :  { %v2026_v25 = vpop.eup %2025  ;;  %v902_v24 = vpop.xlane.xlu1 %901  ;;  %1365 = vrot.lane.b32.xlu1 %v1296_v33, %s2138_s4 }
 0x315   :  { %v2896_v53 = vpop.xlane.xlu0 %1187  ;;  %2031 = vrcp.f32 %v902_v24  ;;  %v977_v7 = vmul.f32 %v2026_v25, %v2673_v42 }
 0x317   :  { %v1297_v19 = vmul.f32 2.0, %v977_v7 }
 0x318   :  { %v2028_v6 = vpop.eup %2027  ;;  %v2899_v54 = vpop.xlane.xlu1 %1177 }
 0x319   :  { %v892_v27 = vpop.xlane.xlu0 %891  ;;  %1367 = vrot.lane.b32.xlu0 %v1297_v19, %s2138_s4  ;;  %v983_v12 = vmul.f32 %v2028_v6, %v2681_v29 }
 0x31a   :  { %2033 = vrcp.f32 %v892_v27 }
 0x31b   :  { %v2030_v59 = vpop.eup %2029  ;;  %v1303_v14 = vmul.f32 2.0, %v983_v12 }
 0x31c   :  { %v2903_v11 = vpop.xlane.xlu1 %1189  ;;  %v978_v20 = vmul.f32 %v2030_v59, %v2687_v26 }
 0x31d   :  { %v904_v9 = vpop.xlane.xlu0 %903  ;;  %1379 = vrot.lane.b32.xlu0 %v1303_v14, %s2138_s4 }
 0x31e   :  { %2035 = vrcp.f32 %v904_v9  ;;  %v1298_v42 = vmul.f32 2.0, %v978_v20 }
 0x31f   :  { %v2032_v34 = vpop.eup %2031 }
 0x320   :  { %v894_v33 = vpop.xlane.xlu1 %893  ;;  %1369 = vrot.lane.b32.xlu1 %v1298_v42, %s2138_s4  ;;  %v984_v29 = vmul.f32 %v2032_v34, %v2695_v39 }
 0x321   :  { %v2908_v25 = vpop.xlane.xlu0 %1179  ;;  %2037 = vrcp.f32 %v894_v33 }
 0x322   :  { %v1304_v24 = vmul.f32 2.0, %v984_v29 }
 0x324   :  { %v2034_v7 = vpop.eup %2033  ;;  %v906_v19 = vpop.xlane.xlu1 %905  ;;  %1381 = vrot.lane.b32.xlu1 %v1304_v24, %s2138_s4 }
 0x325   :  { %v2912_v6 = vpop.xlane.xlu0 %1191  ;;  %2039 = vrcp.f32 %v906_v19  ;;  %v979_v26 = vmul.f32 %v2034_v7, %v2705_v48 }
 0x327   :  { %v1299_v27 = vmul.f32 2.0, %v979_v26 }
 0x328   :  { %v2036_v12 = vpop.eup %2035  ;;  %v2915_v59 = vpop.xlane.xlu1 %1181 }
 0x329   :  { %v908_v14 = vpop.xlane.xlu0 %907  ;;  %1371 = vrot.lane.b32.xlu0 %v1299_v27, %s2138_s4  ;;  %v985_v39 = vmul.f32 %v2036_v12, %v2713_v45 }
 0x32a   :  { %2041 = vrcp.f32 %v908_v14 }
 0x32b   :  { %v2038_v9 = vpop.eup %2037  ;;  %v1305_v20 = vmul.f32 2.0, %v985_v39 }
 0x32c   :  { %v2919_v42 = vpop.xlane.xlu1 %1193  ;;  %v980_v33 = vmul.f32 %v2038_v9, %v2719_v52 }
 0x32d   :  { %v2921_v34 = vpop.xlane.xlu0 %1195  ;;  %1383 = vrot.lane.b32.xlu0 %v1305_v20, %s2138_s4 }
 0x32e   :  { %v1300_v48 = vmul.f32 2.0, %v980_v33 }
 0x32f   :  { %v2040_v29 = vpop.eup %2039 }
 0x330   :  { %v910_v24 = vpop.xlane.xlu1 %909  ;;  %1373 = vrot.lane.b32.xlu1 %v1300_v48, %s2138_s4  ;;  %v986_v19 = vmul.f32 %v2040_v29, %v2727_v61 }
 0x331   :  { %v912_v7 = vpop.xlane.xlu0 %911  ;;  %2043 = vrcp.f32 %v910_v24 }
 0x332   :  { %2045 = vrcp.f32 %v912_v7  ;;  %v1306_v45 = vmul.f32 2.0, %v986_v19 }
 0x334   :  { %v2042_v26 = vpop.eup %2041  ;;  %v2927_v27 = vpop.xlane.xlu1 %1197  ;;  %1385 = vrot.lane.b32.xlu1 %v1306_v45, %s2138_s4 }
 0x335   :  { %v2930_v12 = vpop.xlane.xlu0 %1199  ;;  %v987_v52 = vmul.f32 %v2042_v26, %v2737_v60 }
 0x337   :  { %v1307_v14 = vmul.f32 2.0, %v987_v52 }
 0x338   :  { %v914_v39 = vpop.xlane.xlu1 %913 }
 0x339   :  { %v916_v9 = vpop.xlane.xlu0 %915  ;;  %2047 = vrcp.f32 %v914_v39  ;;  %1387 = vrot.lane.b32.xlu0 %v1307_v14, %s2138_s4 }
 0x33a   :  { %2049 = vrcp.f32 %v916_v9 }
 0x33b   :  { %v2044_v61 = vpop.eup %2043 }
 0x33c   :  { %v2046_v20 = vpop.eup %2045  ;;  %v2934_v33 = vpop.xlane.xlu1 %1201  ;;  %v988_v29 = vmul.f32 %v2044_v61, %v2751_v31 }
 0x33d   :  { %v2936_v48 = vpop.xlane.xlu0 %1203  ;;  %v989_v24 = vmul.f32 %v2046_v20, %v2753_v46 }
 0x33e   :  { %v1308_v7 = vmul.f32 2.0, %v988_v29 }
 0x33f   :  { %v1309_v19 = vmul.f32 2.0, %v989_v24 }
 0x340   :  { %v918_v60 = vpop.xlane.xlu1 %917  ;;  %1389 = vrot.lane.b32.xlu1 %v1308_v7, %s2138_s4 }
 0x341   :  { %v920_v45 = vpop.xlane.xlu0 %919  ;;  %2051 = vrcp.f32 %v918_v60  ;;  %1391 = vrot.lane.b32.xlu0 %v1309_v19, %s2138_s4 }
 0x342   :  { %2053 = vrcp.f32 %v920_v45 }
 0x343   :  { %v2048_v26 = vpop.eup %2047 }
 0x344   :  { %v2050_v52 = vpop.eup %2049  ;;  %v2942_v14 = vpop.xlane.xlu1 %1205  ;;  %v990_v31 = vmul.f32 %v2048_v26, %v2767_v3 }
 0x345   :  { %v2944_v39 = vpop.xlane.xlu0 %1207  ;;  %v991_v46 = vmul.f32 %v2050_v52, %v2769_v22 }
 0x346   :  { %v1310_v9 = vmul.f32 2.0, %v990_v31 }
 0x347   :  { %v1311_v61 = vmul.f32 2.0, %v991_v46 }
 0x348   :  { %v922_v20 = vpop.xlane.xlu1 %921  ;;  %1393 = vrot.lane.b32.xlu1 %v1310_v9, %s2138_s4 }
 0x349   :  { %v924_v29 = vpop.xlane.xlu0 %923  ;;  %2055 = vrcp.f32 %v922_v20  ;;  %1395 = vrot.lane.b32.xlu0 %v1311_v61, %s2138_s4 }
 0x34a   :  { %2057 = vrcp.f32 %v924_v29 }
 0x34b   :  { %v2052_v24 = vpop.eup %2051 }
 0x34c   :  { %v2054_v7 = vpop.eup %2053  ;;  %v2950_v19 = vpop.xlane.xlu1 %1209  ;;  %v992_v3 = vmul.f32 %v2052_v24, %v2783_v21 }
 0x34d   :  { %v2952_v60 = vpop.xlane.xlu0 %1211  ;;  %v993_v22 = vmul.f32 %v2054_v7, %v2785_v62 }
 0x34e   :  { %v1312_v45 = vmul.f32 2.0, %v992_v3 }
 0x34f   :  { %v1313_v26 = vmul.f32 2.0, %v993_v22 }
 0x350   :  { %v926_v52 = vpop.xlane.xlu1 %925  ;;  %1397 = vrot.lane.b32.xlu1 %v1312_v45, %s2138_s4 }
 0x351   :  { %v928_v31 = vpop.xlane.xlu0 %927  ;;  %2059 = vrcp.f32 %v926_v52  ;;  %1399 = vrot.lane.b32.xlu0 %v1313_v26, %s2138_s4 }
 0x352   :  { %2061 = vrcp.f32 %v928_v31 }
 0x353   :  { %v2056_v46 = vpop.eup %2055 }
 0x354   :  { %v2058_v9 = vpop.eup %2057  ;;  %v2958_v61 = vpop.xlane.xlu1 %1213  ;;  %v994_v21 = vmul.f32 %v2056_v46, %v2799_v0 }
 0x355   :  { %v2960_v20 = vpop.xlane.xlu0 %1215  ;;  %v995_v62 = vmul.f32 %v2058_v9, %v2801_v44 }
 0x356   :  { %v1314_v29 = vmul.f32 2.0, %v994_v21 }
 0x357   :  { %v1315_v24 = vmul.f32 2.0, %v995_v62 }
 0x358   :  { %v930_v7 = vpop.xlane.xlu1 %929  ;;  %1401 = vrot.lane.b32.xlu1 %v1314_v29, %s2138_s4 }
 0x359   :  { %v932_v3 = vpop.xlane.xlu0 %931  ;;  %2063 = vrcp.f32 %v930_v7  ;;  %1403 = vrot.lane.b32.xlu0 %v1315_v24, %s2138_s4 }
 0x35a   :  { %2065 = vrcp.f32 %v932_v3 }
 0x35b   :  { %v2060_v22 = vpop.eup %2059 }
 0x35c   :  { %v2062_v45 = vpop.eup %2061  ;;  %v2966_v26 = vpop.xlane.xlu1 %1217  ;;  %v996_v0 = vmul.f32 %v2060_v22, %v2815_v57 }
 0x35d   :  { %v2968_v52 = vpop.xlane.xlu0 %1219  ;;  %v997_v44 = vmul.f32 %v2062_v45, %v2817_v50 }
 0x35e   :  { %v1316_v31 = vmul.f32 2.0, %v996_v0 }
 0x35f   :  { %v1317_v46 = vmul.f32 2.0, %v997_v44 }
 0x360   :  { %v934_v9 = vpop.xlane.xlu1 %933  ;;  %1405 = vrot.lane.b32.xlu1 %v1316_v31, %s2138_s4 }
 0x361   :  { %v936_v21 = vpop.xlane.xlu0 %935  ;;  %2067 = vrcp.f32 %v934_v9  ;;  %1407 = vrot.lane.b32.xlu0 %v1317_v46, %s2138_s4 }
 0x362   :  { %2069 = vrcp.f32 %v936_v21 }
 0x363   :  { %v2064_v62 = vpop.eup %2063  ;;  %2071 = vrcp.f32 %v2862_v16 }
 0x364   :  { %v2066_v29 = vpop.eup %2065  ;;  %v2975_v24 = vpop.xlane.xlu1 %1221  ;;  %v998_v57 = vmul.f32 %v2064_v62, %v2831_v15 }
 0x365   :  { %v999_v50 = vmul.f32 %v2066_v29, %v2833_v32  ;;  %v2983_v16 = vpop.xlane.xlu0 %1223 }
 0x366   :  { %v1318_v7 = vmul.f32 2.0, %v998_v57 }
 0x367   :  { %v1319_v3 = vmul.f32 2.0, %v999_v50 }
 0x368   :  { %v938_v22 = vpop.xlane.xlu1 %937  ;;  %1409 = vrot.lane.b32.xlu1 %v1318_v7, %s2138_s4 }
 0x369   :  { %2073 = vrcp.f32 %v938_v22  ;;  %1411 = vrot.lane.b32.xlu0 %v1319_v3, %s2138_s4  ;;  %v1356_v21 = vpop.permute.xlu0 %1355 }
 0x36a   :  { %2075 = vrcp.f32 %v2865_v36 }
 0x36b   :  { %v2068_v45 = vpop.eup %2067  ;;  %2077 = vrcp.f32 %v2870_v13 }
 0x36c   :  { %v2070_v0 = vpop.eup %2069  ;;  %v1000_v15 = vmul.f32 %v2068_v45, %v2844_v1  ;;  %v2987_v31 = vpop.xlane.xlu1 %1225  ;;  %2079 = vrcp.f32 %v2867_v63 }
 0x36d   :  { %v1001_v32 = vmul.f32 %v2070_v0, %v2846_v5  ;;  %v2072_v44 = vpop.eup %2071  ;;  %2081 = vrcp.f32 %v2875_v56 }
 0x36e   :  { %v1320_v46 = vmul.f32 2.0, %v1000_v15  ;;  %v2992_v36 = vmul.f32 %v2072_v44, %v2618_v30  ;;  %2083 = vrcp.f32 %v2882_v17 }
 0x36f   :  { %v1321_v9 = vmul.f32 2.0, %v1001_v32  ;;  %2085 = vrcp.f32 %v2878_v58 }
 0x370   :  { %1413 = vrot.lane.b32.xlu1 %v1320_v46, %s2138_s4  ;;  %v1451_v1 = vadd.f32 %v1356_v21, %v2992_v36  ;;  %2087 = vrcp.f32 %v2887_v10 }
 0x371   :  { %1415 = vrot.lane.b32.xlu0 %v1321_v9, %s2138_s4  ;;  %2089 = vrcp.f32 %v2892_v40 }
 0x372   :  { %v1358_v13 = vpop.permute.xlu1 %1357  ;;  %2091 = vrcp.f32 %v2896_v53 }
 0x373   :  { %v2074_v62 = vpop.eup %2073  ;;  %2093 = vrcp.f32 %v2899_v54 }
 0x374   :  { %v1002_v5 = vmul.f32 %v2074_v62, %v2856_v8  ;;  %v2076_v63 = vpop.eup %2075  ;;  %2095 = vrcp.f32 %v2903_v11 }
 0x375   :  { %1488 = vperm.xlu0 %1837, %v1451_v1   ;;  %v2078_v29 = vpop.eup %2077  ;;  %v3002_v30 = vmul.f32 %v2076_v63, %v2631_v55  ;;  %2097 = vrcp.f32 %v2908_v25 }
 0x376   :  { %v1360_v57 = vpop.permute.xlu1 %1359  ;;  %v1322_v50 = vmul.f32 2.0, %v1002_v5  ;;  %v2080_v56 = vpop.eup %2079  ;;  %v3006_v7 = vmul.f32 %v2078_v29, %v2647_v2  ;;  %2099 = vrcp.f32 %v2912_v6 }
 0x377   :  { %v1452_v8 = vadd.f32 %v1358_v13, %v3002_v30  ;;  %v3011_v22 = vmul.f32 %v2080_v56, %v2633_v47  ;;  %v2082_v58 = vpop.eup %2081  ;;  %2101 = vrcp.f32 %v2915_v59 }
 0x378   :  { %1417 = vrot.lane.b32.xlu1 %v1322_v50, %s2138_s4  ;;  %v2084_v10 = vpop.eup %2083  ;;  %v3016_v2 = vmul.f32 %v2082_v58, %v2657_v28  ;;  %2103 = vrcp.f32 %v2919_v42 }
 0x379   :  { %v1453_v45 = vadd.f32 %v1360_v57, %v3011_v22  ;;  %v2086_v0 = vpop.eup %2085  ;;  %v3020_v15 = vmul.f32 %v2084_v10, %v2671_v18  ;;  %2105 = vrcp.f32 %v2921_v34  ;;  %v3432_v34 = vld [vmem:[#allocation3_spill] sm:$0xff] }
 0x37a   :  { %v1362_v17 = vpop.permute.xlu1 %1361  ;;  %v2088_v47 = vpop.eup %2087  ;;  %v3026_v9 = vmul.f32 %v2086_v0, %v2665_v38  ;;  %2107 = vrcp.f32 %v2927_v27 }
 0x37b   :  { %v1454_v3 = vadd.f32 %v1362_v17, %v3006_v7  ;;  %v1376_v55 = vpop.permute.xlu0 %1375  ;;  %v3029_v28 = vmul.f32 %v2088_v47, %v2679_v23  ;;  %v2090_v21 = vpop.eup %2089  ;;  %2109 = vrcp.f32 %v2930_v12 }
 0x37c   :  { %1493 = vperm.xlu1 %1838, %v1452_v8   ;;  %v1461_v32 = vadd.f32 %v1376_v55, %v3016_v2  ;;  %v3035_v54 = vmul.f32 %v2090_v21, %v2689_v49  ;;  %v2092_v38 = vpop.eup %2091  ;;  %2111 = vrcp.f32 %v2934_v33 }
 0x37d   :  { %1503 = vperm.xlu0 %1837, %v1454_v3   ;;  %v2094_v23 = vpop.eup %2093  ;;  %v3040_v5 = vmul.f32 %v2092_v38, %v2697_v43  ;;  %2113 = vrcp.f32 %v2936_v48 }
 0x37e   :  { %v3045_v11 = vmul.f32 %v2094_v23, %v2703_v41  ;;  %v2096_v49 = vpop.eup %2095  ;;  %2115 = vrcp.f32 %v2942_v14 }
 0x37f   :  { %v1364_v40 = vpop.permute.xlu0 %1363  ;;  %v3050_v25 = vmul.f32 %v2096_v49, %v2711_v51  ;;  %v2098_v56 = vpop.eup %2097  ;;  %2117 = vrcp.f32 %v2944_v39 }
 0x380   :  { %1498 = vperm.xlu1 %1838, %v1453_v45   ;;  %v1455_v18 = vadd.f32 %v1364_v40, %v3026_v9  ;;  %v3055_v41 = vmul.f32 %v2098_v56, %v2721_v37  ;;  %v2100_v6 = vpop.eup %2099  ;;  %2119 = vrcp.f32 %v2950_v19 }
 0x381   :  { %v2102_v59 = vpop.eup %2101  ;;  %v3060_v51 = vmul.f32 %v2100_v6, %v2729_v35  ;;  %2121 = vrcp.f32 %v2952_v60  ;;  %v3438_v6 = vld [vmem:[#allocation8_spill] sm:$0xff] }
 0x382   :  { %v1378_v44 = vpop.permute.xlu1 %1377  ;;  %v3064_v42 = vmul.f32 %v2102_v59, %v2735_v4  ;;  %v2104_v10 = vpop.eup %2103  ;;  %v3433_v4 = vld [vmem:[#allocation2_spill] sm:$0xff]  ;;  %v3439_v59 = vld [vmem:[#allocation9_spill] sm:$0xff]  ;;  %2123 = vrcp.f32 %v2958_v61 }
 0x383   :  { %v1462_v46 = vadd.f32 %v1378_v44, %v3020_v15  ;;  %v3070_v0 = vmul.f32 %v2104_v10, %v3432_v34  ;;  %v2106_v47 = vpop.eup %2105  ;;  %2125 = vrcp.f32 %v2960_v20 }
 0x384   :  { %1538 = vperm.xlu1 %1838, %v1461_v32   ;;  %v3074_v44 = vmul.f32 %v2106_v47, %v3433_v4  ;;  %v2108_v27 = vpop.eup %2107  ;;  %v3441_v47 = vld [vmem:[#allocation18_spill] sm:$0xff]  ;;  %2127 = vrcp.f32 %v2966_v26 }
 0x385   :  { %1543 = vperm.xlu0 %1837, %v1462_v46   ;;  %v2110_v12 = vpop.eup %2109  ;;  %2129 = vrcp.f32 %v2968_v52 }
 0x386   :  { %v1366_v53 = vpop.permute.xlu1 %1365  ;;  %v2112_v48 = vpop.eup %2111  ;;  %2131 = vrcp.f32 %v2975_v24 }
 0x387   :  { %v1456_v13 = vadd.f32 %v1366_v53, %v3029_v28  ;;  %v2114_v23 = vpop.eup %2113  ;;  %2133 = vrcp.f32 %v2983_v16 }
 0x388   :  { %1508 = vperm.xlu1 %1838, %v1455_v18   ;;  %v3434_v18 = vld [vmem:[#allocation5_spill] sm:$0xff]  ;;  %v2116_v39 = vpop.eup %2115  ;;  %2135 = vrcp.f32 %v2987_v31 }
 0x389   :  { %1513 = vperm.xlu0 %1837, %v1456_v13   ;;  %v3080_v53 = vmul.f32 %v2108_v27, %v3434_v18  ;;  %v3435_v13 = vld [vmem:[#allocation4_spill] sm:$0xff]  ;;  %v3442_v27 = vld [vmem:[#allocation11_spill] sm:$0xff] }
 0x38a   :  { %v3083_v38 = vmul.f32 %v2110_v12, %v3435_v13 }
 0x38b   :  { %v1368_v62 = vpop.permute.xlu0 %1367 }
 0x38c   :  { %v1457_v1 = vadd.f32 %v1368_v62, %v3035_v54 }
 0x38e   :  { %1518 = vperm.xlu1 %1838, %v1457_v1  }
 0x38f   :  { %v1380_v63 = vpop.permute.xlu0 %1379 }
 0x390   :  { %v1463_v29 = vadd.f32 %v1380_v63, %v3040_v5  ;;  %v3436_v63 = vld [vmem:[#allocation6_spill] sm:$0xff] }
 0x392   :  { %1548 = vperm.xlu1 %1838, %v1463_v29   ;;  %v1370_v57 = vpop.permute.xlu1 %1369  ;;  %v3090_v29 = vmul.f32 %v2112_v48, %v3436_v63  ;;  %v3444_v48 = vld [vmem:[#allocation12_spill] sm:$0xff] }
 0x393   :  { %v1458_v50 = vadd.f32 %v1370_v57, %v3045_v11  ;;  %v3437_v57 = vld [vmem:[#allocation7_spill] sm:$0xff] }
 0x395   :  { %1523 = vperm.xlu0 %1837, %v1458_v50   ;;  %v3093_v50 = vmul.f32 %v2114_v23, %v3437_v57 }
 0x396   :  { %v1382_v43 = vpop.permute.xlu1 %1381 }
 0x397   :  { %v1464_v8 = vadd.f32 %v1382_v43, %v3050_v25 }
 0x399   :  { %1553 = vperm.xlu0 %1837, %v1464_v8   ;;  %v2118_v8 = vpop.eup %2117 }
 0x39a   :  { %v2120_v60 = vpop.eup %2119 }
 0x39b   :  { %v1372_v17 = vpop.permute.xlu0 %1371 }
 0x39c   :  { %v1459_v3 = vadd.f32 %v1372_v17, %v3055_v41  ;;  %v3100_v17 = vmul.f32 %v2116_v39, %v3438_v6  ;;  %v3446_v39 = vld [vmem:[#allocation14_spill] sm:$0xff] }
 0x39e   :  { %1528 = vperm.xlu1 %1838, %v1459_v3  }
 0x39f   :  { %v1384_v58 = vpop.permute.xlu0 %1383 }
 0x3a0   :  { %v1465_v55 = vadd.f32 %v1384_v58, %v3060_v51  ;;  %v3103_v58 = vmul.f32 %v2118_v8, %v3439_v59 }
 0x3a2   :  { %1558 = vperm.xlu1 %1838, %v1465_v55   ;;  %v1374_v37 = vpop.permute.xlu1 %1373 }
 0x3a3   :  { %v1460_v45 = vadd.f32 %v1374_v37, %v3064_v42  ;;  %v2122_v37 = vpop.eup %2121 }
 0x3a4   :  { %v2124_v20 = vpop.eup %2123 }
 0x3a5   :  { %1533 = vperm.xlu0 %1837, %v1460_v45   ;;  %v3440_v45 = vld [vmem:[#allocation17_spill] sm:$0xff]  ;;  %v3120_v12 = vmul.f32 %v2124_v20, %v3442_v27 }
 0x3a6   :  { %v1386_v35 = vpop.permute.xlu1 %1385  ;;  %v3110_v34 = vmul.f32 %v2120_v60, %v3440_v45  ;;  %v3448_v60 = vld [vmem:[#allocation16_spill] sm:$0xff] }
 0x3a7   :  { %v1466_v32 = vadd.f32 %v1386_v35, %v3070_v0 }
 0x3a9   :  { %1563 = vperm.xlu0 %1837, %v1466_v32   ;;  %v3113_v32 = vmul.f32 %v2122_v37, %v3441_v47  ;;  %v3449_v47 = vlaneseq }
 0x3ab   :  { %v1388_v40 = vpop.permute.xlu0 %1387 }
 0x3ac   :  { %v1467_v46 = vadd.f32 %v1388_v40, %v3074_v44 }
 0x3ae   :  { %1568 = vperm.xlu1 %1838, %v1467_v46   ;;  %v2126_v46 = vpop.eup %2125 }
 0x3af   :  { %v2128_v52 = vpop.eup %2127 }
 0x3b0   :  { %v3130_v23 = vmul.f32 %v2128_v52, %v3444_v48 }
 0x3b2   :  { %v1390_v21 = vpop.permute.xlu1 %1389 }
 0x3b3   :  { %v1468_v62 = vadd.f32 %v1390_v21, %v3080_v53  ;;  %v1392_v1 = vpop.permute.xlu0 %1391  ;;  %v3443_v21 = vld [vmem:[#allocation10_spill] sm:$0xff] }
 0x3b4   :  { %v1469_v33 = vadd.f32 %v1392_v1, %v3083_v38  ;;  %v3123_v13 = vmul.f32 %v2126_v46, %v3443_v21 }
 0x3b5   :  { %1573 = vperm.xlu0 %1837, %v1468_v62  }
 0x3b6   :  { %1578 = vperm.xlu1 %1838, %v1469_v33   ;;  %v2130_v33 = vpop.eup %2129 }
 0x3b7   :  { %v2132_v16 = vpop.eup %2131 }
 0x3b8   :  { %v3139_v8 = vmul.f32 %v2132_v16, %v3446_v39 }
 0x3ba   :  { %v1394_v49 = vpop.permute.xlu1 %1393 }
 0x3bb   :  { %v1470_v43 = vadd.f32 %v1394_v49, %v3090_v29  ;;  %v1396_v56 = vpop.permute.xlu0 %1395  ;;  %v3445_v49 = vld [vmem:[#allocation13_spill] sm:$0xff] }
 0x3bc   :  { %v1471_v14 = vadd.f32 %v1396_v56, %v3093_v50  ;;  %v3133_v57 = vmul.f32 %v2130_v33, %v3445_v49 }
 0x3bd   :  { %1583 = vperm.xlu0 %1837, %v1470_v43  }
 0x3be   :  { %1588 = vperm.xlu1 %1838, %v1471_v14   ;;  %v2134_v14 = vpop.eup %2133 }
 0x3bf   :  { %v2136_v31 = vpop.eup %2135 }
 0x3c0   :  { %v3147_v37 = vmul.f32 %v2136_v31, %v3448_v60 }
 0x3c2   :  { %v1398_v3 = vpop.permute.xlu1 %1397 }
 0x3c3   :  { %v1472_v55 = vadd.f32 %v1398_v3, %v3100_v17  ;;  %v1400_v10 = vpop.permute.xlu0 %1399  ;;  %v3447_v3 = vld [vmem:[#allocation15_spill] sm:$0xff] }
 0x3c4   :  { %v1473_v19 = vadd.f32 %v1400_v10, %v3103_v58  ;;  %v3142_v59 = vmul.f32 %v2134_v14, %v3447_v3 }
 0x3c5   :  { %1593 = vperm.xlu0 %1837, %v1472_v55  }
 0x3c6   :  { %1598 = vperm.xlu1 %1838, %v1473_v19  }
 0x3ca   :  { %v1402_v35 = vpop.permute.xlu1 %1401 }
 0x3cb   :  { %v1474_v4 = vadd.f32 %v1402_v35, %v3110_v34  ;;  %v1404_v40 = vpop.permute.xlu0 %1403 }
 0x3cc   :  { %v1475_v61 = vadd.f32 %v1404_v40, %v3113_v32 }
 0x3cd   :  { %1603 = vperm.xlu0 %1837, %v1474_v4   ;;  %v3151_v4 = vand.u32 127, %v3449_v47 }
 0x3ce   :  { %1608 = vperm.xlu1 %1838, %v1475_v61  }
 0x3cf   :  { %vm1485_vm1 = vcmp.eq.s32.totalorder %v3151_v4, 0 }
 0x3d2   :  { %v1406_v18 = vpop.permute.xlu1 %1405 }
 0x3d3   :  { %v1476_v62 = vadd.f32 %v1406_v18, %v3120_v12  ;;  %v1408_v1 = vpop.permute.xlu0 %1407 }
 0x3d4   :  { %v1477_v26 = vadd.f32 %v1408_v1, %v3123_v13 }
 0x3d5   :  { %1613 = vperm.xlu0 %1837, %v1476_v62  }
 0x3d6   :  { %1618 = vperm.xlu1 %1838, %v1477_v26  }
 0x3da   :  { %v1410_v63 = vpop.permute.xlu1 %1409 }
 0x3db   :  { %v1478_v43 = vadd.f32 %v1410_v63, %v3130_v23  ;;  %v1412_v56 = vpop.permute.xlu0 %1411 }
 0x3dc   :  { %v1479_v24 = vadd.f32 %v1412_v56, %v3133_v57 }
 0x3dd   :  { %1623 = vperm.xlu0 %1837, %v1478_v43  }
 0x3de   :  { %1628 = vperm.xlu1 %1838, %v1479_v24  }
 0x3e2   :  { %v1414_v6 = vpop.permute.xlu1 %1413 }
 0x3e3   :  { %v1480_v55 = vadd.f32 %v1414_v6, %v3139_v8  ;;  %v1416_v10 = vpop.permute.xlu0 %1415 }
 0x3e4   :  { %v1481_v19 = vadd.f32 %v1416_v10, %v3142_v59 }
 0x3e5   :  { %1633 = vperm.xlu0 %1837, %v1480_v55  }
 0x3e6   :  { %1638 = vperm.xlu1 %1838, %v1481_v19  }
 0x3ea   :  { %v1418_v45 = vpop.permute.xlu1 %1417 }
 0x3eb   :  { %v1482_v35 = vadd.f32 %v1418_v45, %v3147_v37 }
 0x3ed   :  { %1643 = vperm.xlu0 %1837, %v1482_v35  }
 0x3f4   :  { %v1489_v40 = vpop.permute.xlu0 %1488 }
 0x3f5   :  { %v1646_v61 = vsel %vm1485_vm1, %v1489_v40, %v2992_v36 }
 0x3f6   :  { %1678 = vst [vmem:[%s3351_s5] sm:$0xff] %v1646_v61 }
 0x3fb   :  { %v1494_v20 = vpop.permute.xlu1 %1493 }
 0x3fc   :  { %v1647_v46 = vsel %vm1485_vm1, %v1494_v20, %v3002_v30  ;;  %v1504_v27 = vpop.permute.xlu0 %1503 }
 0x3fd   :  { %1679 = vst [vmem:[%s3351_s5 + $0x8] sm:$0xff] %v1647_v46  ;;  %v1649_v18 = vsel %vm1485_vm1, %v1504_v27, %v3006_v7 }
 0x3fe   :  { %1681 = vst [vmem:[%s3351_s5 + $0x18] sm:$0xff] %v1649_v18 }
 0x3ff   :  { %v1499_v36 = vpop.permute.xlu1 %1498 }
 0x400   :  { %v1648_v21 = vsel %vm1485_vm1, %v1499_v36, %v3011_v22 }
 0x401   :  { %1680 = vst [vmem:[%s3351_s5 + $0x10] sm:$0xff] %v1648_v21 }
 0x403   :  { %v1539_v30 = vpop.permute.xlu1 %1538 }
 0x404   :  { %v1656_v62 = vsel %vm1485_vm1, %v1539_v30, %v3016_v2  ;;  %v1544_v1 = vpop.permute.xlu0 %1543 }
 0x405   :  { %1688 = vst [vmem:[%s3351_s5 + $0x50] sm:$0xff] %v1656_v62  ;;  %v1657_v7 = vsel %vm1485_vm1, %v1544_v1, %v3020_v15 }
 0x406   :  { %1689 = vst [vmem:[%s3351_s5 + $0x58] sm:$0xff] %v1657_v7 }
 0x407   :  { %v1509_v22 = vpop.permute.xlu1 %1508 }
 0x408   :  { %v1650_v26 = vsel %vm1485_vm1, %v1509_v22, %v3026_v9  ;;  %v1514_v52 = vpop.permute.xlu0 %1513 }
 0x409   :  { %1682 = vst [vmem:[%s3351_s5 + $0x20] sm:$0xff] %v1650_v26  ;;  %v1651_v2 = vsel %vm1485_vm1, %v1514_v52, %v3029_v28 }
 0x40a   :  { %1683 = vst [vmem:[%s3351_s5 + $0x28] sm:$0xff] %v1651_v2 }
 0x40d   :  { %v1519_v15 = vpop.permute.xlu1 %1518 }
 0x40e   :  { %v1652_v33 = vsel %vm1485_vm1, %v1519_v15, %v3035_v54 }
 0x40f   :  { %1684 = vst [vmem:[%s3351_s5 + $0x30] sm:$0xff] %v1652_v33 }
 0x411   :  { %v1549_v9 = vpop.permute.xlu1 %1548 }
 0x412   :  { %v1658_v48 = vsel %vm1485_vm1, %v1549_v9, %v3040_v5 }
 0x413   :  { %1690 = vst [vmem:[%s3351_s5 + $0x60] sm:$0xff] %v1658_v48 }
 0x414   :  { %v1524_v28 = vpop.permute.xlu0 %1523 }
 0x415   :  { %v1653_v63 = vsel %vm1485_vm1, %v1524_v28, %v3045_v11 }
 0x416   :  { %1685 = vst [vmem:[%s3351_s5 + $0x38] sm:$0xff] %v1653_v63 }
 0x418   :  { %v1554_v54 = vpop.permute.xlu0 %1553 }
 0x419   :  { %v1659_v49 = vsel %vm1485_vm1, %v1554_v54, %v3050_v25 }
 0x41a   :  { %1691 = vst [vmem:[%s3351_s5 + $0x68] sm:$0xff] %v1659_v49 }
 0x41d   :  { %v1529_v5 = vpop.permute.xlu1 %1528 }
 0x41e   :  { %v1654_v43 = vsel %vm1485_vm1, %v1529_v5, %v3055_v41 }
 0x41f   :  { %1686 = vst [vmem:[%s3351_s5 + $0x40] sm:$0xff] %v1654_v43 }
 0x421   :  { %v1559_v11 = vpop.permute.xlu1 %1558 }
 0x422   :  { %v1660_v56 = vsel %vm1485_vm1, %v1559_v11, %v3060_v51 }
 0x423   :  { %1692 = vst [vmem:[%s3351_s5 + $0x70] sm:$0xff] %v1660_v56 }
 0x424   :  { %v1534_v25 = vpop.permute.xlu0 %1533 }
 0x425   :  { %v1655_v24 = vsel %vm1485_vm1, %v1534_v25, %v3064_v42 }
 0x426   :  { %1687 = vst [vmem:[%s3351_s5 + $0x48] sm:$0xff] %v1655_v24 }
 0x428   :  { %v1564_v41 = vpop.permute.xlu0 %1563 }
 0x429   :  { %v1661_v16 = vsel %vm1485_vm1, %v1564_v41, %v3070_v0 }
 0x42a   :  { %1693 = vst [vmem:[%s3351_s5 + $0x78] sm:$0xff] %v1661_v16 }
 0x42d   :  { %v1569_v51 = vpop.permute.xlu1 %1568 }
 0x42e   :  { %v1662_v14 = vsel %vm1485_vm1, %v1569_v51, %v3074_v44 }
 0x42f   :  { %1694 = vst [vmem:[%s3351_s5 + $0x80] sm:$0xff] %v1662_v14 }
 0x434   :  { %v1574_v42 = vpop.permute.xlu0 %1573 }
 0x435   :  { %v1579_v39 = vpop.permute.xlu1 %1578  ;;  %v1663_v6 = vsel %vm1485_vm1, %v1574_v42, %v3080_v53 }
 0x436   :  { %v1664_v0 = vsel %vm1485_vm1, %v1579_v39, %v3083_v38  ;;  %1695 = vst [vmem:[%s3351_s5 + $0x88] sm:$0xff] %v1663_v6 }
 0x437   :  { %1696 = vst [vmem:[%s3351_s5 + $0x90] sm:$0xff] %v1664_v0 }
 0x43c   :  { %v1584_v44 = vpop.permute.xlu0 %1583 }
 0x43d   :  { %v1589_v3 = vpop.permute.xlu1 %1588  ;;  %v1665_v55 = vsel %vm1485_vm1, %v1584_v44, %v3090_v29 }
 0x43e   :  { %v1666_v53 = vsel %vm1485_vm1, %v1589_v3, %v3093_v50  ;;  %1697 = vst [vmem:[%s3351_s5 + $0x98] sm:$0xff] %v1665_v55 }
 0x43f   :  { %1698 = vst [vmem:[%s3351_s5 + $0xa0] sm:$0xff] %v1666_v53 }
 0x444   :  { %v1594_v38 = vpop.permute.xlu0 %1593 }
 0x445   :  { %v1599_v10 = vpop.permute.xlu1 %1598  ;;  %v1667_v19 = vsel %vm1485_vm1, %v1594_v38, %v3100_v17 }
 0x446   :  { %v1668_v29 = vsel %vm1485_vm1, %v1599_v10, %v3103_v58  ;;  %1699 = vst [vmem:[%s3351_s5 + $0xa8] sm:$0xff] %v1667_v19 }
 0x447   :  { %1700 = vst [vmem:[%s3351_s5 + $0xb0] sm:$0xff] %v1668_v29 }
 0x44c   :  { %v1604_v50 = vpop.permute.xlu0 %1603 }
 0x44d   :  { %v1609_v31 = vpop.permute.xlu1 %1608  ;;  %v1669_v60 = vsel %vm1485_vm1, %v1604_v50, %v3110_v34 }
 0x44e   :  { %v1670_v17 = vsel %vm1485_vm1, %v1609_v31, %v3113_v32  ;;  %1701 = vst [vmem:[%s3351_s5 + $0xb8] sm:$0xff] %v1669_v60 }
 0x44f   :  { %1702 = vst [vmem:[%s3351_s5 + $0xc0] sm:$0xff] %v1670_v17 }
 0x454   :  { %v1614_v58 = vpop.permute.xlu0 %1613 }
 0x455   :  { %v1619_v45 = vpop.permute.xlu1 %1618  ;;  %v1671_v35 = vsel %vm1485_vm1, %v1614_v58, %v3120_v12 }
 0x456   :  { %v1672_v34 = vsel %vm1485_vm1, %v1619_v45, %v3123_v13  ;;  %1703 = vst [vmem:[%s3351_s5 + $0xc8] sm:$0xff] %v1671_v35 }
 0x457   :  { %1704 = vst [vmem:[%s3351_s5 + $0xd0] sm:$0xff] %v1672_v34 }
 0x45c   :  { %v1624_v32 = vpop.permute.xlu0 %1623 }
 0x45d   :  { %v1629_v47 = vpop.permute.xlu1 %1628  ;;  %v1673_v40 = vsel %vm1485_vm1, %v1624_v32, %v3130_v23 }
 0x45e   :  { %v1674_v12 = vsel %vm1485_vm1, %v1629_v47, %v3133_v57  ;;  %1705 = vst [vmem:[%s3351_s5 + $0xd8] sm:$0xff] %v1673_v40 }
 0x45f   :  { %1706 = vst [vmem:[%s3351_s5 + $0xe0] sm:$0xff] %v1674_v12 }
 0x464   :  { %v1634_v13 = vpop.permute.xlu0 %1633 }
 0x465   :  { %v1639_v61 = vpop.permute.xlu1 %1638  ;;  %v1675_v20 = vsel %vm1485_vm1, %v1634_v13, %v3139_v8 }
 0x466   :  { %v1676_v23 = vsel %vm1485_vm1, %v1639_v61, %v3142_v59  ;;  %1707 = vst [vmem:[%s3351_s5 + $0xe8] sm:$0xff] %v1675_v20 }
 0x467   :  { %1708 = vst [vmem:[%s3351_s5 + $0xf0] sm:$0xff] %v1676_v23 }
 0x46c   :  { %v1644_v57 = vpop.permute.xlu0 %1643 }
 0x46d   :  { %v1677_v46 = vsel %vm1485_vm1, %v1644_v57, %v3147_v37 }
 0x46e   :  { %1709 = vst [vmem:[%s3351_s5 + $0xf8] sm:$0xff] %v1677_v46 }

</bundles_post_ra>
